<compile_context>
chip_gen: v7x
topology: tpu7x:2x2x1
jax: 0.10.0
libtpu: 0.0.40
codegen_flags: <defaults>
</compile_context>

<pallas_src>
import numpy as np
import jax
import jax.numpy as jnp
from jax.experimental import pallas as pl
from jax.experimental.pallas import tpu as pltpu


def _erf_approx(x):
    # Abramowitz & Stegun 7.1.26, max abs error ~1.5e-7 (fp32-adequate).
    p = 0.3275911
    a1, a2, a3, a4, a5 = (0.254829592, -0.284496736, 1.421413741,
                          -1.453152027, 1.061405429)
    ax = jnp.abs(x)
    # EUP reciprocal (approx) instead of a VALU divide; exp is EUP as well.
    t = pl.reciprocal(1.0 + p * ax, approx=True)
    poly = t * (a1 + t * (a2 + t * (a3 + t * (a4 + t * a5))))
    y = 1.0 - poly * jnp.exp(-ax * ax)
    return jnp.where(x >= 0.0, y, -y)


def _gelu_exact(x):
    # nn.GELU() default: 0.5 * x * (1 + erf(x / sqrt(2)))
    return 0.5 * x * (1.0 + _erf_approx(x * np.float32(1.0 / np.sqrt(2.0))))


def _mlp_kernel(x_ref, w1_ref, b1_ref, w2_ref, b2_ref, o_ref):
    # x_ref: (tm, C)  w1: (C, H) bf16  b1: (1, H) f32  w2: (H, Co) bf16  b2: (1, Co) f32
    cdt = w1_ref.dtype                                   # MXU operand dtype (bf16)
    h = jnp.dot(x_ref[...].astype(cdt), w1_ref[...],
                preferred_element_type=jnp.float32)      # f32 accumulator
    h = _gelu_exact(h + b1_ref[...])                     # bias + GELU in f32
    o = jnp.dot(h.astype(cdt), w2_ref[...],
                preferred_element_type=jnp.float32)
    o_ref[...] = (o + b2_ref[...]).astype(o_ref.dtype)   # lane-dense unmasked store


def _choose_tm(M, tm_max=512):
    """Biggest row tile <= tm_max that still leaves >= 2 grid steps (floor 128)."""
    tm = tm_max
    while tm > 128 and pl.cdiv(M, tm) < 2:
        tm //= 2
    return tm


def mlp_pallas(x, params, *, tm=None, mxu_dtype=jnp.bfloat16):
    """Fused MLP forward. x: (..., C) -> (..., Co). Dropout(p=0) == identity."""
    w1, b1, w2, b2 = params["w1"], params["b1"], params["w2"], params["b2"]
    C = x.shape[-1]
    Hd = w1.shape[1]
    Co = w2.shape[1]
    assert w1.shape == (C, Hd) and w2.shape == (Hd, Co)

    lead = x.shape[:-1]
    M = int(np.prod(lead)) if lead else 1
    x2 = x.reshape(M, C)                                  # wrapper reshape: free

    if tm is None:
        tm = _choose_tm(M)
    grid_m = pl.cdiv(M, tm)                               # ragged last block masked

    # Weights in bf16 (MXU-native), biases stay f32.
    w1c = w1.astype(mxu_dtype)
    w2c = w2.astype(mxu_dtype)
    b1c = b1.reshape(1, Hd).astype(jnp.float32)
    b2c = b2.reshape(1, Co).astype(jnp.float32)

    act_bytes = jnp.dtype(x.dtype).itemsize
    w_bytes = jnp.dtype(mxu_dtype).itemsize

    # VMEM budget: double-buffered streaming tiles + (default double-buffered)
    # resident weights + hidden temporaries, with headroom.
    budget = (2 * tm * C * act_bytes
              + 2 * tm * Co * act_bytes
              + 2 * (C * Hd + Hd * Co) * w_bytes
              + 2 * (Hd + Co) * 4
              + tm * Hd * 4)
    vmem_limit = int(min(max(2 * budget, 32 * 1024 * 1024), 100 * 1024 * 1024))

    cost = pl.CostEstimate(
        flops=2 * M * C * Hd + 2 * M * Hd * Co,
        transcendentals=2 * M * Hd,                       # exp + approx-rcp per hidden elem
        bytes_accessed=(M * C * act_bytes + M * Co * act_bytes
                        + (C * Hd + Hd * Co) * w_bytes + (Hd + Co) * 4),
    )

    out = pl.pallas_call(
        _mlp_kernel,
        out_shape=jax.ShapeDtypeStruct((M, Co), x.dtype),
        grid=(grid_m,),
        in_specs=[
            pl.BlockSpec((tm, C), lambda i: (i, 0)),      # activations stream
            pl.BlockSpec((C, Hd), lambda i: (0, 0)),      # fc1 weight (VMEM resident)
            pl.BlockSpec((1, Hd), lambda i: (0, 0)),      # fc1 bias
            pl.BlockSpec((Hd, Co), lambda i: (0, 0)),     # fc2 weight (VMEM resident)
            pl.BlockSpec((1, Co), lambda i: (0, 0)),      # fc2 bias
        ],
        out_specs=pl.BlockSpec((tm, Co), lambda i: (i, 0)),
        compiler_params=pltpu.CompilerParams(
            dimension_semantics=("parallel",),            # shard rows across TCs (v7x)
            vmem_limit_bytes=vmem_limit,
        ),
        cost_estimate=cost,
    )(x2, w1c, b1c, w2c, b2c)

    return out.reshape(*lead, Co)


def init_mlp_params(key, in_features, hidden_features, out_features):
    """Deterministic synthetic params in PyTorch nn.Linear layout, then converted."""
    k1, k2, k3, k4 = jax.random.split(key, 4)
    # nn.Linear stores weight as (out, in); y = x @ W.T + b
    w1_t = jax.random.normal(k1, (hidden_features, in_features), jnp.float32) / np.sqrt(in_features)
    b1 = jax.random.normal(k2, (hidden_features,), jnp.float32) * 0.02
    w2_t = jax.random.normal(k3, (out_features, hidden_features), jnp.float32) / np.sqrt(hidden_features)
    b2 = jax.random.normal(k4, (out_features,), jnp.float32) * 0.02
    return {"w1": w1_t.T, "b1": b1, "w2": w2_t.T, "b2": b2}


# ----------------- pure-JAX reference (for correctness check) -----------------
def mlp_ref(x, params):
    h = jnp.dot(x, params["w1"], precision=jax.lax.Precision.HIGHEST) + params["b1"]
    h = jax.nn.gelu(h, approximate=False)      # exact erf GELU, like nn.GELU()
    return jnp.dot(h, params["w2"], precision=jax.lax.Precision.HIGHEST) + params["b2"]


if __name__ == "__main__":
    key = jax.random.PRNGKey(0)
    kx, kp = jax.random.split(key)

    # Token layout (B, N, C) as used by GraphFFNet's Mlp; N chosen so that the
    # flattened row count (192) exercises the ragged-last-block masking path.
    B, N, C = 2, 96, 128
    hidden_features, out_features = 256, 128

    x = jax.random.normal(kx, (B, N, C), jnp.float32)
    params = init_mlp_params(kp, C, hidden_features, out_features)

    out = mlp_pallas(x, params)
    jax.block_until_ready(out)

    ref = mlp_ref(x, params)

    assert out.shape == (B, N, out_features), out.shape
    assert bool(jnp.all(jnp.isfinite(out)))
    # Tolerance reflects bf16 MXU operands (f32 accumulation); a broken kernel
    # would be orders of magnitude off.
    max_err = float(jnp.max(jnp.abs(out - ref)))
    mean_err = float(jnp.mean(jnp.abs(out - ref)))
    assert mean_err < 2e-2, ("mean_err", mean_err)
    assert bool(jnp.allclose(out, ref, rtol=5e-2, atol=5e-2)), ("max_err", max_err)
    print("KERNEL_OK")
</pallas_src>

<mosaic_0001>
module attributes {stable_mosaic.version = 11 : i64} {
  func.func @_mlp_kernel(%arg0: i32, %arg1: memref<128x128xf32, #tpu.memory_space<vmem>>, %arg2: memref<128x256xbf16, #tpu.memory_space<vmem>>, %arg3: memref<1x256xf32, #tpu.memory_space<vmem>>, %arg4: memref<256x128xbf16, #tpu.memory_space<vmem>>, %arg5: memref<1x128xf32, #tpu.memory_space<vmem>>, %arg6: memref<128x128xf32, #tpu.memory_space<vmem>>) attributes {dimension_semantics = [#tpu.dimension_semantics<parallel>], iteration_bounds = array<i64: 2>, scalar_prefetch = 0 : i64, scratch_operands = 0 : i64, tpu.core_type = #tpu.core_type<tc>, window_params = [{transform_indices = @transform_0, window_bounds = array<i64: 128, 128>}, {pipeline_mode = #tpu.pipeline_mode<synchronous>, transform_indices = @transform_1, window_bounds = array<i64: 128, 256>}, {pipeline_mode = #tpu.pipeline_mode<synchronous>, transform_indices = @transform_2, window_bounds = array<i64: 1, 256>}, {pipeline_mode = #tpu.pipeline_mode<synchronous>, transform_indices = @transform_3, window_bounds = array<i64: 256, 128>}, {pipeline_mode = #tpu.pipeline_mode<synchronous>, transform_indices = @transform_4, window_bounds = array<i64: 1, 128>}, {transform_indices = @transform_5, window_bounds = array<i64: 128, 128>}]} {
    %c0 = arith.constant 0 : index
    %c0_0 = arith.constant 0 : index
    %0 = vector.load %arg1[%c0, %c0_0] : memref<128x128xf32, #tpu.memory_space<vmem>>, vector<128x128xf32>
    %1 = arith.truncf %0 : vector<128x128xf32> to vector<128x128xbf16>
    %c0_1 = arith.constant 0 : index
    %c0_2 = arith.constant 0 : index
    %2 = vector.load %arg2[%c0_1, %c0_2] : memref<128x256xbf16, #tpu.memory_space<vmem>>, vector<128x256xbf16>
    %cst = arith.constant dense<0.000000e+00> : vector<128x256xf32>
    %3 = tpu.matmul %1, %2, %cst {dimension_numbers = #tpu.dot_dimension_numbers<[1], [0], [0], [1], [0, 0, 1, 1], [], []>} : vector<128x128xbf16>, vector<128x256xbf16>, vector<128x256xf32> -> vector<128x256xf32>
    %c0_3 = arith.constant 0 : index
    %c0_4 = arith.constant 0 : index
    %4 = vector.load %arg3[%c0_3, %c0_4] : memref<1x256xf32, #tpu.memory_space<vmem>>, vector<1x256xf32>
    %5 = vector.broadcast %4 : vector<1x256xf32> to vector<128x256xf32>
    %6 = arith.addf %3, %5 : vector<128x256xf32>
    %cst_5 = arith.constant 5.000000e-01 : f32
    %7 = vector.broadcast %cst_5 : f32 to vector<128x256xf32>
    %8 = arith.mulf %7, %6 : vector<128x256xf32>
    %cst_6 = arith.constant 0.707106769 : f32
    %9 = vector.broadcast %cst_6 : f32 to vector<128x256xf32>
    %10 = arith.mulf %6, %9 : vector<128x256xf32>
    %11 = math.absf %10 : vector<128x256xf32>
    %cst_7 = arith.constant 0.327591091 : f32
    %12 = vector.broadcast %cst_7 : f32 to vector<128x256xf32>
    %13 = arith.mulf %12, %11 : vector<128x256xf32>
    %cst_8 = arith.constant 1.000000e+00 : f32
    %14 = vector.broadcast %cst_8 : f32 to vector<128x256xf32>
    %15 = arith.addf %14, %13 : vector<128x256xf32>
    %16 = tpu.reciprocal %15 {approx = true} : vector<128x256xf32> -> vector<128x256xf32>
    %cst_9 = arith.constant 1.06140542 : f32
    %17 = vector.broadcast %cst_9 : f32 to vector<128x256xf32>
    %18 = arith.mulf %16, %17 : vector<128x256xf32>
    %cst_10 = arith.constant -1.45315206 : f32
    %19 = vector.broadcast %cst_10 : f32 to vector<128x256xf32>
    %20 = arith.addf %19, %18 : vector<128x256xf32>
    %21 = arith.mulf %16, %20 : vector<128x256xf32>
    %cst_11 = arith.constant 1.42141378 : f32
    %22 = vector.broadcast %cst_11 : f32 to vector<128x256xf32>
    %23 = arith.addf %22, %21 : vector<128x256xf32>
    %24 = arith.mulf %16, %23 : vector<128x256xf32>
    %cst_12 = arith.constant -0.284496725 : f32
    %25 = vector.broadcast %cst_12 : f32 to vector<128x256xf32>
    %26 = arith.addf %25, %24 : vector<128x256xf32>
    %27 = arith.mulf %16, %26 : vector<128x256xf32>
    %cst_13 = arith.constant 0.254829586 : f32
    %28 = vector.broadcast %cst_13 : f32 to vector<128x256xf32>
    %29 = arith.addf %28, %27 : vector<128x256xf32>
    %30 = arith.mulf %16, %29 : vector<128x256xf32>
    %cst_14 = arith.constant 0.000000e+00 : f32
    %31 = vector.broadcast %cst_14 : f32 to vector<128x256xf32>
    %32 = arith.subf %31, %11 : vector<128x256xf32>
    %33 = arith.mulf %32, %11 : vector<128x256xf32>
    %34 = math.exp %33 : vector<128x256xf32>
    %35 = arith.mulf %30, %34 : vector<128x256xf32>
    %cst_15 = arith.constant 1.000000e+00 : f32
    %36 = vector.broadcast %cst_15 : f32 to vector<128x256xf32>
    %37 = arith.subf %36, %35 : vector<128x256xf32>
    %cst_16 = arith.constant 0.000000e+00 : f32
    %38 = vector.broadcast %cst_16 : f32 to vector<128x256xf32>
    %39 = arith.cmpf oge, %10, %38 : vector<128x256xf32>
    %cst_17 = arith.constant 0.000000e+00 : f32
    %40 = vector.broadcast %cst_17 : f32 to vector<128x256xf32>
    %41 = arith.subf %40, %37 : vector<128x256xf32>
    %42 = arith.select %39, %37, %41 : vector<128x256xi1>, vector<128x256xf32>
    %cst_18 = arith.constant 1.000000e+00 : f32
    %43 = vector.broadcast %cst_18 : f32 to vector<128x256xf32>
    %44 = arith.addf %43, %42 : vector<128x256xf32>
    %45 = arith.mulf %8, %44 : vector<128x256xf32>
    %46 = arith.truncf %45 : vector<128x256xf32> to vector<128x256xbf16>
    %c0_19 = arith.constant 0 : index
    %c0_20 = arith.constant 0 : index
    %47 = vector.load %arg4[%c0_19, %c0_20] : memref<256x128xbf16, #tpu.memory_space<vmem>>, vector<256x128xbf16>
    %cst_21 = arith.constant dense<0.000000e+00> : vector<128x128xf32>
    %48 = tpu.matmul %46, %47, %cst_21 {dimension_numbers = #tpu.dot_dimension_numbers<[1], [0], [0], [1], [0, 0, 1, 1], [], []>} : vector<128x256xbf16>, vector<256x128xbf16>, vector<128x128xf32> -> vector<128x128xf32>
    %c0_22 = arith.constant 0 : index
    %c0_23 = arith.constant 0 : index
    %49 = vector.load %arg5[%c0_22, %c0_23] : memref<1x128xf32, #tpu.memory_space<vmem>>, vector<1x128xf32>
    %50 = vector.broadcast %49 : vector<1x128xf32> to vector<128x128xf32>
    %51 = arith.addf %48, %50 : vector<128x128xf32>
    %c0_24 = arith.constant 0 : index
    %c0_25 = arith.constant 0 : index
    %52 = vector.load %arg6[%c0_24, %c0_25] : memref<128x128xf32, #tpu.memory_space<vmem>>, vector<128x128xf32>
    tpu.vector_store %arg6[%c0_24, %c0_25], %51 {strides = array<i32>} : memref<128x128xf32, #tpu.memory_space<vmem>>, vector<128x128xf32>,
    return
  }
  func.func @transform_0(%arg0: i32) -> (i32, i32) {
    %c0_i32 = arith.constant 0 : i32
    %c0_i32_0 = arith.constant 0 : i32
    return %arg0, %c0_i32 : i32, i32
  }
  func.func @transform_1(%arg0: i32) -> (i32, i32) {
    %c0_i32 = arith.constant 0 : i32
    %c0_i32_0 = arith.constant 0 : i32
    %c0_i32_1 = arith.constant 0 : i32
    return %c0_i32, %c0_i32_0 : i32, i32
  }
  func.func @transform_2(%arg0: i32) -> (i32, i32) {
    %c0_i32 = arith.constant 0 : i32
    %c0_i32_0 = arith.constant 0 : i32
    %c0_i32_1 = arith.constant 0 : i32
    return %c0_i32, %c0_i32_0 : i32, i32
  }
  func.func @transform_3(%arg0: i32) -> (i32, i32) {
    %c0_i32 = arith.constant 0 : i32
    %c0_i32_0 = arith.constant 0 : i32
    %c0_i32_1 = arith.constant 0 : i32
    return %c0_i32, %c0_i32_0 : i32, i32
  }
  func.func @transform_4(%arg0: i32) -> (i32, i32) {
    %c0_i32 = arith.constant 0 : i32
    %c0_i32_0 = arith.constant 0 : i32
    %c0_i32_1 = arith.constant 0 : i32
    return %c0_i32, %c0_i32_0 : i32, i32
  }
  func.func @transform_5(%arg0: i32) -> (i32, i32) {
    %c0_i32 = arith.constant 0 : i32
    %c0_i32_0 = arith.constant 0 : i32
    return %arg0, %c0_i32 : i32, i32
  }
}

</mosaic_0001>

<bundles_post_ra>
// kernel: tpu_custom_call.1
= control target key start
LH: loop header
LB: loop body
LE: loop exit
PB: predicated region body
PF: predicated region fallthrough
CT: control target
= control target key end

     0   :  { %10 = vsyncpa [#allocation3], 0  ;;  %s3577_s0 = inlined_call_operand.hbm [shape: f32[192,128], index: 0, kind: input, shape index: {}]   ;;  %s3578_s1 = inlined_call_operand.hbm [shape: bf16[128,256], index: 1, kind: input, shape index: {}]   ;;  %s3579_s2 = inlined_call_operand.vmem [shape: f32[1,256], index: 2, kind: input, shape index: {}]   ;;  %s3580_s3 = inlined_call_operand.hbm [shape: bf16[256,128], index: 3, kind: input, shape index: {}]   ;;  %s3581_s4 = inlined_call_operand.vmem [shape: f32[1,128], index: 4, kind: input, shape index: {}]   ;;  %s3582_s5 = inlined_call_operand.hbm [shape: f32[192,128], index: 5, kind: output, shape index: {}]  }
   0x1   :  { %12 = vsyncpa [#allocation3 + $0x1], 0 }
   0x2   :  { %13 = vsyncpa [#allocation6], 0 }
   0x3   :  { %14 = vsyncpa [#allocation4], 0 }
   0x4   :  { %16 = vsyncpa [#allocation4 + $0x1], 0  ;;  %s2303_s18 = smov 0   ;;  %s2305_s19 = smov 0  }
   0x5   :  { %s2307_s20 = smov 0   ;;  %s2309_s21 = smov 0  }
   0x6 LB: > { %s2324_s22 = sadd.s32 4294967295, %s2258_s21   ;;  %s1742_s23 = sadd.s32 4294967294, %s2258_s21   ;;  %s2258_s21 = sphi %s2309_s21, %s3688_s21   ;;  %s2254_s20 = sphi %s2307_s20, %s3687_s20   ;;  %s2250_s19 = sphi %s2305_s19, %s3686_s19   ;;  %s2246_s18 = sphi %s2303_s18, %s3685_s18  }
   0x7   : > { %s2328_s24 = sadd.s32 1, %s2258_s21   ;;  %s29_s25 = sadd.s32 1, %s2254_s20 }
   0x8   : > { %s26_s26 = ssub.s32 %s2258_s21, %s2328_s24  ;;  %p36_p0 = scmp.ne.s32.totalorder %s2254_s20, %s2250_s19 }
   0x9   : > { %p27_p1 = scmp.eq.s32.totalorder %s26_s26, 0  ;;  %p37_p2 = scmp.eq.s32.totalorder %s2258_s21, 0 }
   0xa   : > { %p42_p3 = scmp.ne.s32.totalorder %s2250_s19, %s2246_s18  ;;  %p3583_p4 = scmp.eq.s32.totalorder %s2324_s22, 0 }
   0xb   : > { %s2340_s27 = scalar_select %p27_p1, %s2254_s20, %s29_s25  }
   0xc   : > { %p2342_p5 = por %p37_p2, %p36_p0  ;;  %p2348_p6 = por %p3583_p4, %p42_p3 }
   0xd   : > { %3603 = sst [smem:[#allocation12_spill]] %s2340_s27  ;;  %p150_p7 = scmp.eq.s32.totalorder %s2324_s22, 1 }
   0xe   : > { %s3604_s28 = scalar_select %p2342_p5, 1, 0 }
   0xf   : > { %s3605_s29 = scalar_select %p2348_p6, 1, 0 }
  0x10   : > { %p156_p8 = scmp.eq.s32.totalorder %s1742_s23, 1  ;;  %p1743_p9 = scmp.ge.s32.totalorder %s2258_s21, 1 }
  0x11   : > { %p163_p10 = scmp.lt.s32.totalorder %s2258_s21, 3  ;;  %p2355_p11 = por %p150_p7, %p36_p0 }
  0x12   : > { %p2359_p12 = por %p156_p8, %p42_p3  ;;  %s2260_s8 = smov [#allocation5]  }
  0x13   : > { %s3606_s30 = scalar_select %p2355_p11, 1, 0 }
  0x14   : > { %s3607_s6 = scalar_select %p2359_p12, 1, 0 }
  0x15   : > { %p2363_p13 = pnand %p1743_p9, %p163_p10  ;;  %s175_s9 = sshll.u32 %s2260_s8, 4  ;;  %s176_s9 = int_to_ptr.vmem [resolvable:$true] %s175_s9 }
  0x16   : > { %s2261_s11 = smov [#allocation7]   ;;  %s2104_s15 = scalar_lea.hbm %s3578_s1, 2048 }
  0x17   : > { %s3608_s7 = scalar_select %p2363_p13, 1, 0 }
  0x18   : > { %p1877_p1 = pneg %p2363_p13  ;;  %s191_s12 = sshll.u32 %s2261_s11, 4  ;;  %s2375_s12 = int_to_ptr.vmem [resolvable:$true] %s191_s12 }
  0x19   : > { %p2105_p0 = scmp.ne.s32.totalorder %s3578_s1, %s2104_s15  ;;  %p2111_p9 = scmp.lt.u32.totalorder %s2104_s15, %s3578_s1 }
  0x1a   : > { %p2371_p2 = pnand %p1877_p1, %p3583_p4 }
  0x1c   : > { %p2106_p3 = pneg %p2371_p2 }
  0x1e   : > { %p2107_p7 = pnand %p2106_p3, %p2105_p0 }
  0x20   : > { %p2108_p8 = pneg %p2107_p7 }
  0x22   : > { %p2113_p10 = pnand %p2111_p9, %p2108_p8 }
  0x24   : > { %2116 = shalt.err (!%p2113_p10)
}
  0x25   : > { %s2117_s26 = scalar_lea.vmem %s176_s9, 2048  ;;  %p2125_p11 = scmp.lt.s32.totalorder %s176_s9, %s176_s9 }
  0x26   : > { %p2118_p1 = scmp.ne.s32.totalorder %s176_s9, %s2117_s26  ;;  %p2126_p6 = scmp.lt.s32.totalorder %s2117_s26, %s2117_s26 }
  0x28   : > { %p2120_p4 = pnand %p2118_p1, %p2106_p3  ;;  %p2127_p13 = por %p2126_p6, %p2125_p11 }
  0x2a   : > { %p2121_p12 = pneg %p2120_p4 }
  0x2c   : > { %p2128_p5 = pnand %p2127_p13, %p2121_p12 }
  0x2e   : > { %2131 = shalt.err (!%p2128_p5)
}
  0x2f   : > { %s2262_s8 = smov 128   ;;  %s2263_s11 = smov 8  }
  0x30   : > { %1880 = dma.hbm_to_vmem [thread:$0]  (!%p2371_p2), %s3578_s1, 2048, %s176_s9, [#allocation6], %s2262_s8, %s2262_s8, %s2263_s11  }
  0x31   : > { %s2132_s17 = scalar_lea.hbm %s3580_s3, 2048 }
  0x32   : > { %p2133_p4 = scmp.ne.s32.totalorder %s3580_s3, %s2132_s17  ;;  %p2139_p11 = scmp.lt.u32.totalorder %s2132_s17, %s3580_s3 }
  0x34   : > { %p2135_p5 = pnand %p2133_p4, %p2106_p3 }
  0x36   : > { %p2136_p6 = pneg %p2135_p5 }
  0x38   : > { %p2141_p12 = pnand %p2139_p11, %p2136_p6 }
  0x3a   : > { %2144 = shalt.err (!%p2141_p12)
}
  0x3b   : > { %s2145_s9 = scalar_lea.vmem %s2375_s12, 2048  ;;  %p2153_p8 = scmp.lt.s32.totalorder %s2375_s12, %s2375_s12 }
  0x3c   : > { %p2146_p13 = scmp.ne.s32.totalorder %s2375_s12, %s2145_s9  ;;  %p2154_p9 = scmp.lt.s32.totalorder %s2145_s9, %s2145_s9 }
  0x3e   : > { %p2148_p0 = pnand %p2146_p13, %p2106_p3  ;;  %p2155_p10 = por %p2154_p9, %p2153_p8 }
  0x40   : > { %p2149_p7 = pneg %p2148_p0 }
  0x42   : > { %p2156_p1 = pnand %p2155_p10, %p2149_p7 }
  0x44   : > { %2159 = shalt.err (!%p2156_p1)
}
  0x45   : > { %s2264_s27 = smov 64   ;;  %s2265_s8 = smov 4  }
  0x46   : > { %1883 = dma.hbm_to_vmem [thread:$0]  (!%p2371_p2), %s3580_s3, 2048, %s2375_s12, [#allocation6], %s2264_s27, %s2264_s27, %s2265_s8  }
  0x47   : > { %p1746_p4 = scmp.ge.s32.totalorder %s2258_s21, 2 }
  0x48   : > { %p3610_p3 = scmp.ne.s32.totalorder (!%p1746_p4), %s3604_s28, 0 }
  0x49   : > { %204 = sbr.rel (%p1746_p4) target bundleno = 115 (0x73), region = 32 }
  0x50   : > { %207 = sbr.rel (!%p3610_p3) target bundleno = 115 (0x73), region = 36  ;;  %s208_s14 = sand.u32 (%p3610_p3), 1, %s2254_s20  }
  0x51   : > { %s1748_s15 = sshll.u32 (%p3610_p3), %s2258_s21, 4  ;;  %s1747_s16 = sshll.u32 (%p3610_p3), %s208_s14, 7 }
  0x52   : > { %s214_s17 = ssub.s32 (%p3610_p3), 24, %s1748_s15  ;;  %s2434_s23 = scalar_lea.sflag (%p3610_p3), [#allocation3], %s208_s14 }
  0x53   : > { %p215_p5 = scmp.lt.s32.totalorder (%p3610_p3), %s214_s17, 16  ;;  %s212_s25 = scalar_lea.vmem (%p3610_p3), [#allocation2], %s1747_s16 }
  0x57   : > { %s3690_s17 = smov (!%p215_p5, %s214_s17), 16 }
  0x58   : > { %s2431_s10 = sshll.u32 %s3690_s17, 7 }
  0x59   : > { %s219_s12 = ssub.s32 2048, %s2431_s10 }
  0x5a   : > { %220 = vsyncadd %s2434_s23, %s219_s12  ;;  %p1750_p2 = scmp.ne.s32.totalorder %s2431_s10, 0  ;;  %s1801_s28 = sshll.u32 %s2258_s21, 11 }
  0x5b   : > { %s2442_s27 = scalar_lea.hbm %s3577_s0, %s1801_s28  ;;  %s225_s8 = sshll.u32 %s212_s25, 4  ;;  %s2444_s8 = int_to_ptr.vmem [resolvable:$true] %s225_s8 }
  0x5c   : > { %s2160_s11 = scalar_lea.hbm %s2442_s27, %s2431_s10  ;;  %s2164_s15 = scalar_lea.hbm %s3577_s0, 3072 }
  0x5d   : > { %p2161_p6 = scmp.ne.s32.totalorder %s2442_s27, %s2160_s11  ;;  %p2165_p13 = scmp.lt.u32.totalorder %s2442_s27, %s3577_s0 }
  0x5e   : > { %p2166_p0 = scmp.lt.u32.totalorder %s2164_s15, %s2160_s11  ;;  %p2168_p8 = scmp.lt.u32.totalorder %s2160_s11, %s2442_s27 }
  0x5f   : > { %p2162_p11 = pnand %p2161_p6, %p1750_p2 }
  0x60   : > { %p2167_p7 = por %p2166_p0, %p2165_p13 }
  0x61   : > { %p2163_p12 = pneg %p2162_p11 }
  0x62   : > { %p2169_p9 = por %p2168_p8, %p2167_p7 }
  0x64   : > { %p2170_p10 = pnand %p2169_p9, %p2163_p12 }
  0x66   : > { %2173 = shalt.err (!%p2170_p10)
}
  0x67   : > { %s2174_s12 = scalar_lea.vmem %s2444_s8, %s2431_s10  ;;  %s2266_s25 = smov [#allocation2]  }
  0x68   : > { %p2175_p1 = scmp.ne.s32.totalorder %s2444_s8, %s2174_s12  ;;  %s2178_s28 = sshll.u32 %s2266_s25, 4  ;;  %s2179_s28 = int_to_ptr.vmem [resolvable:$false] %s2178_s28 }
  0x69   : > { %s2180_s26 = scalar_lea.vmem %s2179_s28, 4096  ;;  %p2181_p6 = scmp.lt.s32.totalorder %s2444_s8, %s2179_s28 }
  0x6a   : > { %p2176_p3 = pnand %p2175_p1, %p1750_p2  ;;  %p2182_p11 = scmp.lt.s32.totalorder %s2180_s26, %s2174_s12 }
  0x6c   : > { %p2177_p5 = pneg %p2176_p3  ;;  %p2183_p13 = por %p2182_p11, %p2181_p6 }
  0x6e   : > { %p2184_p0 = pnand %p2183_p13, %p2177_p5 }
  0x70   : > { %2187 = shalt.err (!%p2184_p0)
}
  0x71   : > { %s2267_s9 = smov 128   ;;  %s2268_s11 = smov 8  }
  0x72   : > { %231 = dma.hbm_to_vmem [thread:$0]  (%p1750_p2), %s2442_s27, %s2431_s10, %s2444_s8, %s2434_s23, %s2267_s9, %s2267_s9, %s2268_s11  }
  0x73 PF: > { %p3611_p12 = scmp.ne.s32.totalorder %s3608_s7, 0 }
  0x75   : > { %237 = sbr.rel (%p3611_p12) target bundleno = 888 (0x378), region = 40 }
  0x7c   : > { %s2474_s13 = sand.u32 1, %s2250_s19   ;;  %p3612_p7 = scmp.ne.s32.totalorder %s3605_s29, 0 }
  0x7d   : > { %s1755_s14 = sshll.u32 %s2474_s13, 7  ;;  %s240_s15 = scalar_lea.sflag [#allocation3], %s2474_s13 }
  0x7e   : > { %s2480_s16 = scalar_lea.vmem [#allocation2], %s1755_s14 }
  0x7f   : > { %2233 = dma.done.wait (%p3612_p7), %s240_s15, 2048  }
  0x80   : > { %2235 = vsyncadd (%p3612_p7), %s240_s15, 4294965248  ;;  %p3613_p2 = scmp.eq.s32.totalorder %s2324_s22, 0 }
  0x82   : > { %2237 = dma.done.wait (%p3613_p2), [#allocation6], 4096   ;;  %p3614_p8 = pmov %p3613_p2 }
  0x83   : > { %v2269_v0 = vmov 0   ;;  %v1936_v1 = vld [vmem:[#allocation5 + $0x4] ss:$8 sps:$4 sm:$0xff]   ;;  %v1938_v2 = vld [vmem:[#allocation5] ss:$8 sps:$4 sm:$0xff]   ;;  %v291_v20 = vld [vmem:[%s2480_s16 + $0x10] sm:$0xff]  ;;  %v331_v49 = vlaneseq }
  0x84   : > { %2239 = vsyncadd (%p3614_p8), [#allocation6], 4294963200  ;;  %453 = vmatprep.mubr.bf16.mxu0 %v2269_v0  ;;  %421 = vmatprep.subr.bf16.mxu0 %v1936_v1  ;;  %v1939_v3 = vld [vmem:[#allocation5 + $0x14] ss:$8 sps:$4 sm:$0xff]   ;;  %v1941_v4 = vld [vmem:[#allocation5 + $0x10] ss:$8 sps:$4 sm:$0xff]  }
  0x85   : > { %422 = vmatpush1.bf16.msra.mxu0 %v1938_v2  ;;  %v1942_v5 = vld [vmem:[#allocation5 + $0x24] ss:$8 sps:$4 sm:$0xff]   ;;  %v1944_v6 = vld [vmem:[#allocation5 + $0x20] ss:$8 sps:$4 sm:$0xff]   ;;  %v1945_v7 = vld [vmem:[#allocation5 + $0x34] ss:$8 sps:$4 sm:$0xff]  }
  0x86   : > { %423 = vmatprep.subr.bf16.mxu0 %v1939_v3  ;;  %v1947_v8 = vld [vmem:[#allocation5 + $0x30] ss:$8 sps:$4 sm:$0xff]   ;;  %v1948_v9 = vld [vmem:[#allocation5 + $0x44] ss:$8 sps:$4 sm:$0xff]   ;;  %v1950_v10 = vld [vmem:[#allocation5 + $0x40] ss:$8 sps:$4 sm:$0xff]  }
  0x87   : > { %v1951_v11 = vld [vmem:[#allocation5 + $0x54] ss:$8 sps:$4 sm:$0xff]   ;;  %v1953_v12 = vld [vmem:[#allocation5 + $0x50] ss:$8 sps:$4 sm:$0xff]   ;;  %v1954_v13 = vld [vmem:[#allocation5 + $0x64] ss:$8 sps:$4 sm:$0xff]  }
  0x88   : > { %v1956_v14 = vld [vmem:[#allocation5 + $0x60] ss:$8 sps:$4 sm:$0xff]   ;;  %v1957_v15 = vld [vmem:[#allocation5 + $0x74] ss:$8 sps:$4 sm:$0xff]   ;;  %v1959_v16 = vld [vmem:[#allocation5 + $0x70] ss:$8 sps:$4 sm:$0xff]  }
  0x89   : > { %424 = vmatpush1.bf16.msra.mxu0 %v1941_v4  ;;  %v289_v17 = vld [vmem:[%s2480_s16] sm:$0xff]  ;;  %v290_v18 = vld [vmem:[%s2480_s16 + $0x8] sm:$0xff]  ;;  %v292_v21 = vld [vmem:[%s2480_s16 + $0x18] sm:$0xff]  ;;  %v332_v50 = vshrl.u32 %v331_v49, 7  ;;  %s3481_s27 = scalar_lea.vmem [#allocation8], %s1755_s14  ;;  %s1631_s8 = scalar_lea.sflag [#allocation4], %s2474_s13 }
  0x8a   : > { %425 = vmatprep.subr.bf16.mxu0 %v1942_v5  ;;  %v305_v19 = vpack.c.bf16 %v290_v18, %v289_v17  ;;  %v306_v22 = vpack.c.bf16 %v292_v21, %v291_v20  ;;  %v293_v23 = vld [vmem:[%s2480_s16 + $0x20] sm:$0xff]  ;;  %v294_v24 = vld [vmem:[%s2480_s16 + $0x28] sm:$0xff]  ;;  %v295_v26 = vld [vmem:[%s2480_s16 + $0x30] sm:$0xff]  ;;  %p3682_p9 = scmp.ne.s32.totalorder %s3606_s30, 0 }
  0x8b   : > { %v307_v25 = vpack.c.bf16 %v294_v24, %v293_v23  ;;  %v296_v27 = vld [vmem:[%s2480_s16 + $0x38] sm:$0xff]  ;;  %v297_v29 = vld [vmem:[%s2480_s16 + $0x40] sm:$0xff]  ;;  %v298_v30 = vld [vmem:[%s2480_s16 + $0x48] sm:$0xff]  ;;  %v333_v51 = vsub.s32 0, %v332_v50  ;;  %v337_v2 = vsub.s32 1, %v332_v50  ;;  %s1793_s17 = sshll.u32 (%p3682_p9), %s2324_s22, 4 }
  0x8c   : > { %v308_v28 = vpack.c.bf16 %v296_v27, %v295_v26  ;;  %v309_v31 = vpack.c.bf16 %v298_v30, %v297_v29  ;;  %v299_v32 = vld [vmem:[%s2480_s16 + $0x50] sm:$0xff]  ;;  %v300_v33 = vld [vmem:[%s2480_s16 + $0x58] sm:$0xff]  ;;  %v301_v35 = vld [vmem:[%s2480_s16 + $0x60] sm:$0xff]  ;;  %s1639_s12 = ssub.s32 (%p3682_p9), 24, %s1793_s17 }
  0x8d   : > { %426 = vmatpush1.bf16.msra.mxu0 %v1944_v6  ;;  %v310_v34 = vpack.c.bf16 %v300_v33, %v299_v32  ;;  %v302_v36 = vld [vmem:[%s2480_s16 + $0x68] sm:$0xff]  ;;  %v303_v38 = vld [vmem:[%s2480_s16 + $0x70] sm:$0xff]  ;;  %v304_v39 = vld [vmem:[%s2480_s16 + $0x78] sm:$0xff]  ;;  %p1640_p10 = scmp.lt.s32.totalorder (%p3682_p9), %s1639_s12, 16 }
  0x8e   : > { %427 = vmatprep.subr.bf16.mxu0 %v1945_v7  ;;  %v311_v37 = vpack.c.bf16 %v302_v36, %v301_v35  ;;  %v312_v40 = vpack.c.bf16 %v304_v39, %v303_v38  ;;  %v1960_v41 = vld [vmem:[#allocation7 + $0x40] sm:$0xff]   ;;  %v1962_v43 = vld [vmem:[#allocation7 + $0x48] sm:$0xff]   ;;  %v1964_v45 = vld [vmem:[#allocation7 + $0x50] sm:$0xff]  }
  0x8f   : > { %1803 = vmatprep.subr.bf16.mxu1 %v1960_v41  ;;  %v1961_v42 = vld [vmem:[#allocation7] sm:$0xff]   ;;  %v1963_v44 = vld [vmem:[#allocation7 + $0x8] sm:$0xff]   ;;  %v1965_v46 = vld [vmem:[#allocation7 + $0x10] sm:$0xff]  }
  0x90   : > { %1804 = vmatpush3.bf16.msra.mxu1 %v1961_v42  ;;  %v1966_v47 = vld [vmem:[#allocation7 + $0x58] sm:$0xff]   ;;  %v1968_v52 = vld [vmem:[#allocation7 + $0x60] sm:$0xff]   ;;  %v1970_v7 = vld [vmem:[#allocation7 + $0x68] sm:$0xff]  }
  0x91   : > { %428 = vmatpush1.bf16.msra.mxu0 %v1947_v8  ;;  %1805 = vmatprep.subr.bf16.mxu1 %v1962_v43  ;;  %v1967_v48 = vld [vmem:[#allocation7 + $0x18] sm:$0xff]   ;;  %v329_v53 = vld [vmem:[%s3579_s2] sm:$0x3]  ;;  %v1973_v39 = vld [vmem:[#allocation7 + $0x30] sm:$0xff]  }
  0x92   : > { %429 = vmatprep.subr.bf16.mxu0 %v1948_v9  ;;  %v2517_v54 = vrot.slane %v329_v53, %v333_v51  ;;  %v1969_v55 = vld [vmem:[#allocation7 + $0x20] sm:$0xff]   ;;  %v1971_v9 = vld [vmem:[#allocation7 + $0x28] sm:$0xff]  }
  0x94   : > { %1806 = vmatpush3.bf16.msra.mxu1 %v1963_v44 }
  0x95   : > { %430 = vmatpush1.bf16.msra.mxu0 %v1950_v10  ;;  %1807 = vmatprep.subr.bf16.mxu1 %v1964_v45  ;;  %v2539_v10 = vrot.slane %v329_v53, %v337_v2  ;;  %v1974_v2 = vld [vmem:[#allocation7 + $0x78] sm:$0xff]  }
  0x96   : > { %431 = vmatprep.subr.bf16.mxu0 %v1951_v11 }
  0x98   : > { %1808 = vmatpush3.bf16.msra.mxu1 %v1965_v46 }
  0x99   : > { %432 = vmatpush1.bf16.msra.mxu0 %v1953_v12  ;;  %1809 = vmatprep.subr.bf16.mxu1 %v1966_v47 }
  0x9a   : > { %433 = vmatprep.subr.bf16.mxu0 %v1954_v13 }
  0x9c   : > { %1810 = vmatpush3.bf16.msra.mxu1 %v1967_v48 }
  0x9d   : > { %434 = vmatpush1.bf16.msra.mxu0 %v1956_v14  ;;  %1811 = vmatprep.subr.bf16.mxu1 %v1968_v52 }
  0x9e   : > { %435 = vmatprep.subr.bf16.mxu0 %v1957_v15 }
  0xa0   : > { %1812 = vmatpush3.bf16.msra.mxu1 %v1969_v55 }
  0xa1   : > { %436 = vmatpush1.bf16.msra.mxu0 %v1959_v16  ;;  %1813 = vmatprep.subr.bf16.mxu1 %v1970_v7  ;;  %v1972_v16 = vld [vmem:[#allocation7 + $0x70] sm:$0xff]  }
  0xa4   : > { %454 = vmatmul.mubr.bf16.vlgmr.msra.gmra.mrb[0].mxu0 %v305_v19  ;;  %1814 = vmatpush3.bf16.msra.mxu1 %v1971_v9 }
  0xa5   : > { %463 = vmatprep.mubr.bf16.mxu0 %v2269_v0  ;;  %1815 = vmatprep.subr.bf16.mxu1 %v1972_v16 }
  0xa8   : > { %1816 = vmatpush3.bf16.msra.mxu1 %v1973_v39 }
  0xa9   : > { %1817 = vmatprep.subr.bf16.mxu1 %v1974_v2 }
  0xac   : > { %464 = vmatmul.mubr.bf16.gmra.mrb[4].mxu0 %v306_v22 }
  0xad   : > { %473 = vmatprep.mubr.bf16.mxu0 %v2269_v0 }
  0xb4   : > { %474 = vmatmul.mubr.bf16.gmra.mrb[8].mxu0 %v307_v25 }
  0xb5   : > { %483 = vmatprep.mubr.bf16.mxu0 %v2269_v0 }
  0xbc   : > { %484 = vmatmul.mubr.bf16.gmra.mrb[12].mxu0 %v308_v28 }
  0xbd   : > { %493 = vmatprep.mubr.bf16.mxu0 %v2269_v0 }
  0xc4   : > { %494 = vmatmul.mubr.bf16.gmra.mrb[16].mxu0 %v309_v31 }
  0xc5   : > { %503 = vmatprep.mubr.bf16.mxu0 %v2269_v0 }
  0xcc   : > { %504 = vmatmul.mubr.bf16.gmra.mrb[20].mxu0 %v310_v34 }
  0xcd   : > { %513 = vmatprep.mubr.bf16.mxu0 %v2269_v0 }
  0xd4   : > { %514 = vmatmul.mubr.bf16.gmra.mrb[24].mxu0 %v311_v37 }
  0xd5   : > { %523 = vmatprep.mubr.bf16.mxu0 %v2269_v0 }
  0xdc   : > { %524 = vmatmul.mubr.bf16.gmra.mrb[28].mxu0 %v312_v40 }
 0x177   : > { %v455_v56 = vpop.f32.mrb[0].mxu0 }
 0x178   : > { %v2520_v57 = vadd.f32 %v455_v56, %v2517_v54  ;;  %v457_v58 = vpop.f32.mrb[1].mxu0 }
 0x179   : > { %v459_v59 = vpop.f32.mrb[2].mxu0  ;;  %v458_v18 = vadd.f32 %v457_v58, %v2539_v10 }
 0x17a   : > { %v2523_v60 = vmul.f32 0.70710677, %v2520_v57  ;;  %v2526_v61 = vadd.f32 %v459_v59, %v2517_v54  ;;  %v461_v62 = vpop.f32.mrb[3].mxu0 }
 0x17b   : > { %v2574_v29 = vmul.f32 0.70710677, %v458_v18  ;;  %v462_v32 = vadd.f32 %v461_v62, %v2539_v10 }
 0x17c   : > { %v2529_v63 = vand.u32 2147483647, %v2523_v60  ;;  %v2532_v0 = vmul.f32 0.70710677, %v2526_v61  ;;  %vm1206_vm0 = vcmp.ge.f32.partialorder %v2523_v60, 0.0 }
 0x17d   : > { %3615 = vst [vmem:[#allocation13_spill] sm:$0xff] %v2574_v29  ;;  %v599_v42 = vand.u32 2147483647, %v2574_v29  ;;  %v2593_v46 = vmul.f32 0.70710677, %v462_v32 }
 0x17e   : > { %v630_v1 = vmul.f32 0.3275911, %v2529_v63  ;;  %v2536_v3 = vand.u32 2147483647, %v2532_v0  ;;  %v1014_v49 = vsub.f32 0.0, %v2529_v63  ;;  %vm1208_vm1 = vcmp.ge.f32.partialorder %v2532_v0, 0.0 }
 0x17f   : > { %v465_v6 = vpop.f32.mrb[4].mxu0  ;;  %3616 = vst [vmem:[#allocation14_spill] sm:$0xff] %v2593_v46  ;;  %v631_v58 = vmul.f32 0.3275911, %v599_v42 }
 0x180   : > { %v662_v4 = vadd.f32 1.0, %v630_v1  ;;  %v632_v5 = vmul.f32 0.3275911, %v2536_v3  ;;  %v467_v8 = vpop.f32.mrb[5].mxu0  ;;  %v2542_v14 = vadd.f32 %v465_v6, %v2517_v54  ;;  %v2618_v6 = vand.u32 2147483647, %v2593_v46 }
 0x181   : > { %v469_v12 = vpop.f32.mrb[6].mxu0  ;;  %v2545_v15 = vadd.f32 %v467_v8, %v2539_v10  ;;  %v1046_v8 = vmul.f32 %v1014_v49, %v2529_v63  ;;  %v1016_v16 = vsub.f32 0.0, %v2536_v3  ;;  %v2635_v63 = vmul.f32 0.5, %v2526_v61 }
 0x182   : > { %1976 = vrcp.f32 %v662_v4  ;;  %v664_v11 = vadd.f32 1.0, %v632_v5  ;;  %v471_v13 = vpop.f32.mrb[7].mxu0  ;;  %v2548_v17 = vadd.f32 %v469_v12, %v2517_v54  ;;  %v2552_v19 = vmul.f32 0.70710677, %v2542_v14 }
 0x183   : > { %v2555_v20 = vadd.f32 %v471_v13, %v2539_v10  ;;  %v2558_v21 = vmul.f32 0.70710677, %v2545_v15  ;;  %v1015_v4 = vsub.f32 0.0, %v599_v42  ;;  %v2625_v12 = vmul.f32 0.5, %v2520_v57 }
 0x184   : > { %1978 = vrcp.f32 %v664_v11  ;;  %v2561_v22 = vmul.f32 0.70710677, %v2548_v17  ;;  %v2564_v24 = vand.u32 2147483647, %v2552_v19  ;;  %v1975_v11 = vld [vmem:[#allocation7 + $0x38] sm:$0xff]   ;;  %vm1210_vm2 = vcmp.ge.f32.partialorder %v2552_v19, 0.0 }
 0x185   : > { %v2567_v26 = vand.u32 2147483647, %v2558_v21  ;;  %v2578_v31 = vmul.f32 0.70710677, %v2555_v20  ;;  %1818 = vmatpush3.bf16.msra.mxu1 %v1975_v11  ;;  %v1047_v57 = vmul.f32 %v1015_v4, %v599_v42  ;;  %vm1211_vm3 = vcmp.ge.f32.partialorder %v2558_v21, 0.0 }
 0x186   : > { %v2570_v27 = vand.u32 2147483647, %v2561_v22  ;;  %v634_v30 = vmul.f32 0.3275911, %v2564_v24  ;;  %v1018_v49 = vsub.f32 0.0, %v2564_v24  ;;  %vm1212_vm4 = vcmp.ge.f32.partialorder %v2561_v22, 0.0 }
 0x187   : > { %v475_v23 = vpop.f32.mrb[8].mxu0  ;;  %v635_v33 = vmul.f32 0.3275911, %v2567_v26  ;;  %v2586_v37 = vand.u32 2147483647, %v2578_v31  ;;  %vm1213_vm5 = vcmp.ge.f32.partialorder %v2578_v31, 0.0 }
 0x188   : > { %v477_v25 = vpop.f32.mrb[9].mxu0  ;;  %v636_v34 = vmul.f32 0.3275911, %v2570_v27  ;;  %v666_v36 = vadd.f32 1.0, %v634_v30  ;;  %v2601_v51 = vadd.f32 %v475_v23, %v2517_v54  ;;  %v2637_v30 = vmul.f32 0.5, %v462_v32 }
 0x189   : > { %v2572_v28 = vpop.f32.mrb[10].mxu0  ;;  %v667_v41 = vadd.f32 1.0, %v635_v33  ;;  %v637_v44 = vmul.f32 0.3275911, %v2586_v37  ;;  %v2613_v62 = vadd.f32 %v477_v25, %v2539_v10  ;;  %v2632_v25 = vmul.f32 0.5, %v458_v18 }
 0x18a   : > { %v2588_v38 = vpop.f32.mrb[11].mxu0  ;;  %1980 = vrcp.f32 %v666_v36  ;;  %v668_v43 = vadd.f32 1.0, %v636_v34  ;;  %v2610_v59 = vmul.f32 0.70710677, %v2601_v51  ;;  %3619 = vst [vmem:[#allocation17_spill] sm:$0xff] %v2637_v30  ;;  %v663_v34 = vadd.f32 1.0, %v631_v58 }
 0x18b   : > { %1982 = vrcp.f32 %v667_v41  ;;  %v669_v50 = vadd.f32 1.0, %v637_v44  ;;  %v2630_v23 = vmul.f32 0.70710677, %v2613_v62  ;;  %3618 = vst [vmem:[#allocation16_spill] sm:$0xff] %v2632_v25  ;;  %v1078_v18 = vmul.f32 1.442695, %v1046_v8 }
 0x18c   : > { %v2583_v35 = vpop.eup %1976  ;;  %1984 = vrcp.f32 %v668_v43  ;;  %v2622_v9 = vand.u32 2147483647, %v2610_v59  ;;  %v633_v43 = vmul.f32 0.3275911, %v2618_v6  ;;  %v2661_v2 = vadd.f32 %v2572_v28, %v2517_v54 }
 0x18d   : > { %v726_v40 = vmul.f32 1.0614054, %v2583_v35  ;;  %1986 = vrcp.f32 %v669_v50  ;;  %3617 = vst [vmem:[#allocation15_spill] sm:$0xff] %v2630_v23  ;;  %v2641_v39 = vand.u32 2147483647, %v2630_v23  ;;  %v1019_v8 = vsub.f32 0.0, %v2567_v26 }
 0x18e   : > { %v2597_v48 = vpop.eup %1978  ;;  %v638_v33 = vmul.f32 0.3275911, %v2622_v9  ;;  %v1050_v30 = vmul.f32 %v1018_v49, %v2564_v24  ;;  %vm1214_vm6 = vcmp.ge.f32.partialorder %v2610_v59, 0.0 }
 0x18f   : > { %v758_v45 = vadd.f32 -1.4531521, %v726_v40  ;;  %v2595_v47 = vpop.f32.mrb[12].mxu0  ;;  %v728_v55 = vmul.f32 1.0614054, %v2597_v48 }
 0x190   : > { %v2603_v52 = vpop.f32.mrb[13].mxu0  ;;  %v670_v61 = vadd.f32 1.0, %v638_v33  ;;  %v639_v50 = vmul.f32 0.3275911, %v2641_v39 }
 0x191   : > { %v790_v53 = vmul.f32 %v2583_v35, %v758_v45  ;;  %v2607_v56 = vpop.f32.mrb[14].mxu0  ;;  %v760_v5 = vadd.f32 -1.4531521, %v728_v55  ;;  %v1048_v45 = vmul.f32 %v1016_v16, %v2536_v3  ;;  %v2665_v3 = vmul.f32 1.442695, %v1047_v57 }
 0x192   : > { %v2615_v1 = vpop.f32.mrb[15].mxu0  ;;  %1988 = vrcp.f32 %v670_v61  ;;  %v671_v33 = vadd.f32 1.0, %v639_v50  ;;  %v1051_v50 = vmul.f32 %v1019_v8, %v2567_v26 }
 0x193   : > { %v822_v7 = vadd.f32 1.4214138, %v790_v53  ;;  %v792_v13 = vmul.f32 %v2597_v48, %v760_v5  ;;  %1990 = vpow2.f32 %v1078_v18  ;;  %v1082_v61 = vmul.f32 1.442695, %v1048_v45 }
 0x194   : > { %v2643_v40 = vpop.eup %1980  ;;  %1992 = vrcp.f32 %v671_v33  ;;  %v1020_v45 = vsub.f32 0.0, %v2570_v27  ;;  %v1088_v23 = vmul.f32 1.442695, %v1051_v50 }
 0x195   : > { %v824_v36 = vadd.f32 1.4214138, %v792_v13  ;;  %v854_v41 = vmul.f32 %v2583_v35, %v822_v7  ;;  %v2649_v32 = vpop.eup %1982  ;;  %v730_v42 = vmul.f32 1.0614054, %v2643_v40  ;;  %1994 = vrcp.f32 %v663_v34 }
 0x196   : > { %v731_v58 = vmul.f32 1.0614054, %v2649_v32  ;;  %v2669_v11 = vpop.eup %1984  ;;  %1996 = vpow2.f32 %v1082_v61 }
 0x197   : > { %v2647_v44 = vpop.f32.mrb[16].mxu0  ;;  %v856_v55 = vmul.f32 %v2597_v48, %v824_v36  ;;  %v762_v7 = vadd.f32 -1.4531521, %v730_v42  ;;  %v886_v13 = vadd.f32 -0.28449672, %v854_v41  ;;  %v2676_v25 = vpop.eup %1986 }
 0x198   : > { %v2655_v53 = vpop.f32.mrb[17].mxu0  ;;  %v763_v16 = vadd.f32 -1.4531521, %v731_v58  ;;  %v732_v57 = vmul.f32 1.0614054, %v2669_v11 }
 0x199   : > { %v2663_v4 = vpop.f32.mrb[18].mxu0  ;;  %v794_v28 = vmul.f32 %v2643_v40, %v762_v7  ;;  %v888_v42 = vadd.f32 -0.28449672, %v856_v55  ;;  %v2680_v41 = vmul.f32 0.70710677, %v2661_v2  ;;  %v918_v7 = vmul.f32 %v2583_v35, %v886_v13 }
 0x19a   : > { %3620 = vst [vmem:[#allocation18_spill] sm:$0xff] %v2663_v4  ;;  %v2671_v36 = vpop.f32.mrb[19].mxu0  ;;  %v795_v5 = vmul.f32 %v2649_v32, %v763_v16  ;;  %v764_v58 = vadd.f32 -1.4531521, %v732_v57  ;;  %v733_v49 = vmul.f32 1.0614054, %v2676_v25 }
 0x19b   : > { %3621 = vst [vmem:[#allocation19_spill] sm:$0xff] %v2671_v36  ;;  %3622 = vst [vmem:[#allocation20_spill] sm:$0xff] %v2680_v41  ;;  %v826_v18 = vadd.f32 1.4214138, %v794_v28  ;;  %v2687_v46 = vand.u32 2147483647, %v2680_v41  ;;  %v920_v26 = vmul.f32 %v2597_v48, %v888_v42 }
 0x19c   : > { %v827_v24 = vadd.f32 1.4214138, %v795_v5  ;;  %v1086_v16 = vmul.f32 1.442695, %v1050_v30  ;;  %v796_v33 = vmul.f32 %v2669_v11, %v764_v58  ;;  %v1021_v28 = vsub.f32 0.0, %v2586_v37  ;;  %v2701_v58 = vpop.eup %1988 }
 0x19d   : > { %v858_v55 = vmul.f32 %v2643_v40, %v826_v18  ;;  %v765_v8 = vadd.f32 -1.4531521, %v733_v49  ;;  %v640_v5 = vmul.f32 0.3275911, %v2687_v46  ;;  %v950_v36 = vadd.f32 0.2548296, %v918_v7 }
 0x19e   : > { %v859_v41 = vmul.f32 %v2649_v32, %v827_v24  ;;  %v828_v18 = vadd.f32 1.4214138, %v796_v33  ;;  %v665_v4 = vadd.f32 1.0, %v633_v43  ;;  %v1991_v24 = vpop.eup %1990  ;;  %v952_v33 = vadd.f32 0.2548296, %v920_v26 }
 0x19f   : > { %v2692_v29 = vpop.f32.mrb[20].mxu0  ;;  %v890_v57 = vadd.f32 -0.28449672, %v858_v55  ;;  %v797_v34 = vmul.f32 %v2676_v25, %v765_v8  ;;  %v672_v42 = vadd.f32 1.0, %v640_v5  ;;  %v1053_v55 = vmul.f32 %v1021_v28, %v2586_v37  ;;  %v2713_v5 = vpop.eup %1992 }
 0x1a0   : > { %3623 = vst [vmem:[#allocation21_spill] sm:$0xff] %v2692_v29  ;;  %v2696_v13 = vpop.f32.mrb[21].mxu0  ;;  %v1052_v29 = vmul.f32 %v1020_v45, %v2570_v27  ;;  %v860_v61 = vmul.f32 %v2669_v11, %v828_v18  ;;  %1998 = vpow2.f32 %v1086_v16  ;;  %v891_v27 = vadd.f32 -0.28449672, %v859_v41 }
 0x1a1   : > { %3624 = vst [vmem:[#allocation22_spill] sm:$0xff] %v2696_v13  ;;  %v2699_v30 = vpop.f32.mrb[22].mxu0  ;;  %v734_v13 = vmul.f32 1.0614054, %v2701_v58  ;;  %v922_v7 = vmul.f32 %v2643_v40, %v890_v57  ;;  %2000 = vrcp.f32 %v672_v42  ;;  %v982_v43 = vmul.f32 %v2583_v35, %v950_v36 }
 0x1a2   : > { %3625 = vst [vmem:[#allocation23_spill] sm:$0xff] %v2699_v30  ;;  %v2705_v49 = vpop.f32.mrb[23].mxu0  ;;  %v829_v30 = vadd.f32 1.4214138, %v797_v34  ;;  %v892_v45 = vadd.f32 -0.28449672, %v860_v61  ;;  %2002 = vpow2.f32 %v1088_v23  ;;  %v984_v42 = vmul.f32 %v2597_v48, %v952_v33 }
 0x1a3   : > { %v1090_v50 = vmul.f32 1.442695, %v1052_v29  ;;  %v766_v28 = vadd.f32 -1.4531521, %v734_v13  ;;  %v3626_v16 = vsub.f32 0.0, %v2618_v6  ;;  %v1022_v35 = vsub.f32 0.0, %v2622_v9 }
 0x1a4   : > { %v861_v37 = vmul.f32 %v2676_v25, %v829_v30  ;;  %v1092_v41 = vmul.f32 1.442695, %v1053_v55  ;;  %v735_v57 = vmul.f32 1.0614054, %v2713_v5  ;;  %v954_v13 = vadd.f32 0.2548296, %v922_v7  ;;  %v2732_v55 = vpop.eup %1994 }
 0x1a5   : > { %v1049_v18 = vmul.f32 %v3626_v16, %v2618_v6  ;;  %v798_v29 = vmul.f32 %v2701_v58, %v766_v28  ;;  %v923_v30 = vmul.f32 %v2649_v32, %v891_v27  ;;  %v924_v6 = vmul.f32 %v2669_v11, %v892_v45  ;;  %3629 = vst [vmem:[#allocation26_spill] sm:$0xff] %v2732_v55  ;;  %v1997_v33 = vpop.eup %1996 }
 0x1a6   : > { %v893_v61 = vadd.f32 -0.28449672, %v861_v37  ;;  %v767_v23 = vadd.f32 -1.4531521, %v735_v57  ;;  %v1142_v16 = vmul.f32 %v1991_v24, %v982_v43  ;;  %2004 = vpow2.f32 %v1090_v50 }
 0x1a7   : > { %v2711_v8 = vpop.f32.mrb[24].mxu0  ;;  %v2736_v48 = vadd.f32 %v2588_v38, %v2539_v10  ;;  %2006 = vpow2.f32 %v2665_v3  ;;  %v2739_v37 = vmul.f32 1.442695, %v1049_v18  ;;  %v1144_v45 = vmul.f32 %v1997_v33, %v984_v42 }
 0x1a8   : > { %v2717_v26 = vpop.f32.mrb[25].mxu0  ;;  %v925_v7 = vmul.f32 %v2676_v25, %v893_v61  ;;  %v799_v27 = vmul.f32 %v2713_v5, %v767_v23  ;;  %v2744_v28 = vmul.f32 0.5, %v2542_v14  ;;  %2008 = vpow2.f32 %v1092_v41 }
 0x1a9   : > { %v2723_v34 = vpop.f32.mrb[26].mxu0  ;;  %v1054_v24 = vmul.f32 %v1022_v35, %v2622_v9  ;;  %v986_v38 = vmul.f32 %v2643_v40, %v954_v13  ;;  %v2750_v43 = vmul.f32 0.5, %v2545_v15  ;;  %v955_v3 = vadd.f32 0.2548296, %v923_v30 }
 0x1aa   : > { %3627 = vst [vmem:[#allocation24_spill] sm:$0xff] %v2723_v34  ;;  %v2728_v36 = vpop.f32.mrb[27].mxu0  ;;  %v830_v34 = vadd.f32 1.4214138, %v798_v29  ;;  %v956_v50 = vadd.f32 0.2548296, %v924_v6  ;;  %v1999_v57 = vpop.eup %1998  ;;  %2010 = vrcp.f32 %v665_v4 }
 0x1ab   : > { %3628 = vst [vmem:[#allocation25_spill] sm:$0xff] %v2728_v36  ;;  %v1174_v61 = vsub.f32 1.0, %v1142_v16  ;;  %v2755_v42 = vmul.f32 0.5, %v2548_v17  ;;  %v2759_v9 = vmul.f32 0.70710677, %v2736_v48  ;;  %v2761_v41 = vpop.eup %2000  ;;  %v1023_v29 = vsub.f32 0.0, %v2641_v39 }
 0x1ac   : > { %v862_v14 = vmul.f32 %v2701_v58, %v830_v34  ;;  %v957_v15 = vadd.f32 0.2548296, %v925_v7  ;;  %v831_v40 = vadd.f32 1.4214138, %v799_v27  ;;  %v1176_v35 = vsub.f32 1.0, %v1144_v45  ;;  %v2003_v30 = vpop.eup %2002 }
 0x1ad   : > { %v2766_v13 = vmul.f32 0.5, %v2555_v20  ;;  %v2769_v17 = vmul.f32 0.5, %v2601_v51  ;;  %v1094_v34 = vmul.f32 1.442695, %v1054_v24  ;;  %v1146_v6 = vmul.f32 %v1999_v57, %v986_v38 }
 0x1ae   : > { %v987_v23 = vmul.f32 %v2649_v32, %v955_v3  ;;  %v988_v16 = vmul.f32 %v2669_v11, %v956_v50  ;;  %v736_v4 = vmul.f32 1.0614054, %v2761_v41  ;;  %v1238_v33 = vsub.f32 0.0, %v1174_v61 }
 0x1af   : > { %v2752_v18 = vpop.f32.mrb[28].mxu0  ;;  %v894_v7 = vadd.f32 -0.28449672, %v862_v14  ;;  %v2775_v27 = vmul.f32 0.5, %v2613_v62  ;;  %v2778_v20 = vand.u32 2147483647, %v2759_v9  ;;  %v989_v51 = vmul.f32 %v2676_v25, %v957_v15 }
 0x1b0   : > { %3630 = vst [vmem:[#allocation27_spill] sm:$0xff] %v2752_v18  ;;  %v863_v45 = vmul.f32 %v2713_v5, %v831_v40  ;;  %v1055_v24 = vmul.f32 %v1023_v29, %v2641_v39  ;;  %v1024_v32 = vsub.f32 0.0, %v2687_v46  ;;  %v2005_v38 = vpop.eup %2004  ;;  %v1240_v11 = vsub.f32 0.0, %v1176_v35 }
 0x1b1   : > { %v768_v3 = vadd.f32 -1.4531521, %v736_v4  ;;  %v641_v50 = vmul.f32 0.3275911, %v2778_v20  ;;  %v2788_v62 = vadd.f32 %v2595_v47, %v2517_v54  ;;  %v2790_v57 = vpop.eup %2006  ;;  %v1178_v25 = vsub.f32 1.0, %v1146_v6 }
 0x1b2   : > { %3631 = vst [vmem:[#allocation28_spill] sm:$0xff] %v2790_v57  ;;  %v1147_v14 = vmul.f32 %v2003_v30, %v987_v23  ;;  %v1148_v15 = vmul.f32 %v2005_v38, %v988_v16  ;;  %v2794_v39 = vadd.f32 %v2603_v52, %v2539_v10  ;;  %v2009_v40 = vpop.eup %2008  ;;  %v1270_v29 = vsel %vm1206_vm0, %v1174_v61, %v1238_v33 }
 0x1b3   : > { %v926_v4 = vmul.f32 %v2701_v58, %v894_v7  ;;  %2012 = vpow2.f32 %v1094_v34  ;;  %v673_v55 = vadd.f32 1.0, %v641_v50  ;;  %v1149_v18 = vmul.f32 %v2009_v40, %v989_v51 }
 0x1b4   : > { %v895_v47 = vadd.f32 -0.28449672, %v863_v45  ;;  %v1096_v36 = vmul.f32 1.442695, %v1055_v24  ;;  %v1056_v57 = vmul.f32 %v1024_v32, %v2687_v46  ;;  %v1272_v30 = vsel %vm1208_vm1, %v1176_v35, %v1240_v11  ;;  %v2806_v60 = vpop.eup %2010 }
 0x1b5   : > { %v800_v6 = vmul.f32 %v2761_v41, %v768_v3  ;;  %2014 = vrcp.f32 %v673_v55  ;;  %v2804_v52 = vmul.f32 0.70710677, %v2788_v62  ;;  %3632 = vst [vmem:[#allocation29_spill] sm:$0xff] %v2806_v60  ;;  %v1302_v61 = vadd.f32 1.0, %v1270_v29 }
 0x1b6   : > { %v1242_v23 = vsub.f32 0.0, %v1178_v25  ;;  %v1179_v34 = vsub.f32 1.0, %v1147_v14  ;;  %v1180_v16 = vsub.f32 1.0, %v1148_v15  ;;  %2016 = vpow2.f32 %v2739_v37 }
 0x1b7   : > { %v958_v0 = vadd.f32 0.2548296, %v926_v4  ;;  %v2812_v46 = vand.u32 2147483647, %v2804_v52  ;;  %v2815_v55 = vmul.f32 0.70710677, %v2794_v39  ;;  %v927_v7 = vmul.f32 %v2713_v5, %v895_v47 }
 0x1b8   : > { %v1304_v35 = vadd.f32 1.0, %v1272_v30  ;;  %v1181_v33 = vsub.f32 1.0, %v1149_v18  ;;  %v1098_v51 = vmul.f32 1.442695, %v1056_v57  ;;  %2018 = vpow2.f32 %v1096_v36 }
 0x1b9   : > { %v832_v45 = vadd.f32 1.4214138, %v800_v6  ;;  %v642_v24 = vmul.f32 0.3275911, %v2812_v46  ;;  %v2821_v37 = vand.u32 2147483647, %v2815_v55  ;;  %v1274_v32 = vsel %vm1210_vm2, %v1178_v25, %v1242_v23 }
 0x1ba   : > { %v1243_v38 = vsub.f32 0.0, %v1179_v34  ;;  %v2826_v11 = vmul.f32 0.5, %v2661_v2  ;;  %v2830_v18 = vadd.f32 %v2607_v56, %v2517_v54  ;;  %v1244_v3 = vsub.f32 0.0, %v1180_v16 }
 0x1bb   : > { %v990_v36 = vmul.f32 %v2701_v58, %v958_v0  ;;  %v674_v50 = vadd.f32 1.0, %v642_v24  ;;  %v643_v57 = vmul.f32 0.3275911, %v2821_v37  ;;  %v2835_v14 = vmul.f32 %v1302_v61, %v2625_v12 }
 0x1bc   : > { %v2838_v19 = vmul.f32 %v1304_v35, %v2635_v63  ;;  %v959_v25 = vadd.f32 0.2548296, %v927_v7  ;;  %2020 = vpow2.f32 %v1098_v51  ;;  %v1245_v15 = vsub.f32 0.0, %v1181_v33 }
 0x1bd   : > { %3633 = vst [vmem:[#allocation30_spill] sm:$0xff] %v2835_v14  ;;  %v2013_v2 = vpop.eup %2012  ;;  %v864_v40 = vmul.f32 %v2761_v41, %v832_v45  ;;  %2022 = vrcp.f32 %v674_v50  ;;  %v675_v56 = vadd.f32 1.0, %v643_v57  ;;  %v1306_v29 = vadd.f32 1.0, %v1274_v32 }
 0x1be   : > { %3634 = vst [vmem:[#allocation31_spill] sm:$0xff] %v2838_v19  ;;  %v2842_v58 = vmul.f32 0.5, %v2736_v48  ;;  %v2845_v4 = vmul.f32 0.70710677, %v2830_v18  ;;  %v2849_v12 = vadd.f32 %v2615_v1, %v2539_v10  ;;  %v1275_v47 = vsel %vm1211_vm3, %v1179_v34, %v1243_v38 }
 0x1bf   : > { %v2851_v63 = vpop.eup %2014  ;;  %v1276_v30 = vsel %vm1212_vm4, %v1180_v16, %v1244_v3  ;;  %v1150_v6 = vmul.f32 %v2013_v2, %v990_v36  ;;  %v2858_v61 = vmul.f32 0.5, %v2788_v62  ;;  %v991_v48 = vmul.f32 %v2713_v5, %v959_v25  ;;  %v2895_v25 = vpop.f32.mrb[29].mxu0 }
 0x1c0   : > { %v737_v23 = vmul.f32 1.0614054, %v2851_v63  ;;  %2024 = vrcp.f32 %v675_v56  ;;  %v2864_v1 = vadd.f32 %v2647_v44, %v2517_v54  ;;  %v2866_v0 = vpop.eup %2016  ;;  %v1277_v21 = vsel %vm1213_vm5, %v1181_v33, %v1245_v15  ;;  %3637 = vst [vmem:[#allocation34_spill] sm:$0xff] %v2895_v25 }
 0x1c1   : > { %3635 = vst [vmem:[#allocation32_spill] sm:$0xff] %v2866_v0  ;;  %v896_v22 = vadd.f32 -0.28449672, %v864_v40  ;;  %v2871_v34 = vand.u32 2147483647, %v2845_v4  ;;  %v2877_v5 = vmul.f32 %v1306_v29, %v2744_v28  ;;  %v1307_v16 = vadd.f32 1.0, %v1275_v47 }
 0x1c2   : > { %v2874_v62 = vmul.f32 0.70710677, %v2849_v12  ;;  %v769_v44 = vadd.f32 -1.4531521, %v737_v23  ;;  %v1025_v35 = vsub.f32 0.0, %v2778_v20  ;;  %v2019_v7 = vpop.eup %2018  ;;  %v1308_v51 = vadd.f32 1.0, %v1276_v30 }
 0x1c3   : > { %3636 = vst [vmem:[#allocation33_spill] sm:$0xff] %v2877_v5  ;;  %v1182_v31 = vsub.f32 1.0, %v1150_v6  ;;  %v644_v33 = vmul.f32 0.3275911, %v2871_v34  ;;  %v1309_v24 = vadd.f32 1.0, %v1277_v21  ;;  %v1151_v32 = vmul.f32 %v2019_v7, %v991_v48  ;;  %v2904_v47 = vpop.f32.mrb[30].mxu0 }
 0x1c4   : > { %v2883_v45 = vand.u32 2147483647, %v2874_v62  ;;  %v801_v38 = vmul.f32 %v2851_v63, %v769_v44  ;;  %v2887_v28 = vmul.f32 0.70710677, %v2864_v1  ;;  %v928_v3 = vmul.f32 %v2761_v41, %v896_v22  ;;  %3639 = vst [vmem:[#allocation36_spill] sm:$0xff] %v2904_v47  ;;  %v3641_v48 = vld [vmem:[#allocation15_spill] sm:$0xff] }
 0x1c5   : > { %v676_v36 = vadd.f32 1.0, %v644_v33  ;;  %v2893_v57 = vadd.f32 %v2655_v53, %v2539_v10  ;;  %v2898_v15 = vmul.f32 %v1307_v16, %v2750_v43  ;;  %v1057_v56 = vmul.f32 %v1025_v35, %v2778_v20  ;;  %v2912_v43 = vpop.f32.mrb[31].mxu0 }
 0x1c6   : > { %v645_v50 = vmul.f32 0.3275911, %v2883_v45  ;;  %v2021_v2 = vpop.eup %2020  ;;  %v833_v40 = vadd.f32 1.4214138, %v801_v38  ;;  %v2902_v29 = vand.u32 2147483647, %v2887_v28  ;;  %v2909_v6 = vmul.f32 %v1308_v51, %v2755_v42 }
 0x1c7   : > { %3638 = vst [vmem:[#allocation35_spill] sm:$0xff] %v2898_v15  ;;  %v2906_v30 = vpop.eup %2022  ;;  %v1246_v53 = vsub.f32 0.0, %v1182_v31  ;;  %vm1215_vm7 = vcmp.ge.f32.partialorder %v3641_v48, 0.0  ;;  %2026 = vrcp.f32 %v676_v36  ;;  %3642 = vst [vmem:[#allocation15_spill] sm:$0xff] %v2912_v43  ;;  %v1183_v21 = vsub.f32 1.0, %v1151_v32 }
 0x1c8   : > { %3640 = vst [vmem:[#allocation37_spill] sm:$0xff] %v2909_v6  ;;  %v677_v23 = vadd.f32 1.0, %v645_v50  ;;  %v738_v20 = vmul.f32 1.0614054, %v2906_v30  ;;  %v1026_v22 = vsub.f32 0.0, %v2812_v46  ;;  %v2918_v44 = vmul.f32 %v1309_v24, %v2766_v13 }
 0x1c9   : > { %v646_v16 = vmul.f32 0.3275911, %v2902_v29  ;;  %v960_v35 = vadd.f32 0.2548296, %v928_v3  ;;  %v2921_v42 = vmul.f32 0.5, %v2794_v39  ;;  %v865_v33 = vmul.f32 %v2851_v63, %v833_v40 }
 0x1ca   : > { %3643 = vst [vmem:[#allocation38_spill] sm:$0xff] %v2918_v44  ;;  %v2924_v7 = vmul.f32 0.70710677, %v2893_v57  ;;  %v2926_v51 = vpop.eup %2024  ;;  %v1100_v32 = vmul.f32 1.442695, %v1057_v56  ;;  %2028 = vrcp.f32 %v677_v23  ;;  %v1278_v36 = vsel %vm1214_vm6, %v1182_v31, %v1246_v53 }
 0x1cb   : > { %v770_v38 = vadd.f32 -1.4531521, %v738_v20  ;;  %v739_v13 = vmul.f32 1.0614054, %v2926_v51  ;;  %v678_v24 = vadd.f32 1.0, %v646_v16  ;;  %v1247_v39 = vsub.f32 0.0, %v1183_v21 }
 0x1cc   : > { %v2933_v3 = vand.u32 2147483647, %v2924_v7  ;;  %v1058_v6 = vmul.f32 %v1026_v22, %v2812_v46  ;;  %v1027_v5 = vsub.f32 0.0, %v2821_v37  ;;  %v992_v40 = vmul.f32 %v2761_v41, %v960_v35  ;;  %v3644_v20 = vld [vmem:[#allocation18_spill] sm:$0xff]  ;;  %v3645_v46 = vld [vmem:[#allocation19_spill] sm:$0xff] }
 0x1cd   : > { %v802_v50 = vmul.f32 %v2906_v30, %v770_v38  ;;  %v771_v56 = vadd.f32 -1.4531521, %v739_v13  ;;  %2030 = vrcp.f32 %v678_v24  ;;  %v1310_v31 = vadd.f32 1.0, %v1278_v36 }
 0x1ce   : > { %v647_v59 = vmul.f32 0.3275911, %v2933_v3  ;;  %v897_v53 = vadd.f32 -0.28449672, %v865_v33  ;;  %v2942_v16 = vadd.f32 %v3644_v20, %v2517_v54  ;;  %2032 = vpow2.f32 %v1100_v32  ;;  %v3649_v20 = vld [vmem:[#allocation20_spill] sm:$0xff] }
 0x1cf   : > { %v834_v23 = vadd.f32 1.4214138, %v802_v50  ;;  %v803_v38 = vmul.f32 %v2926_v51, %v771_v56  ;;  %v2947_v22 = vadd.f32 %v3645_v46, %v2539_v10  ;;  %v1279_v41 = vsel %vm1215_vm7, %v1183_v21, %v1247_v39 }
 0x1d0   : > { %v679_v44 = vadd.f32 1.0, %v647_v59  ;;  %v1102_v36 = vmul.f32 1.442695, %v1058_v6  ;;  %v1059_v33 = vmul.f32 %v1027_v5, %v2821_v37  ;;  %v2955_v24 = vmul.f32 %v2021_v2, %v992_v40 }
 0x1d1   : > { %v866_v35 = vmul.f32 %v2906_v30, %v834_v23  ;;  %v2953_v13 = vpop.eup %2026  ;;  %v835_v32 = vadd.f32 1.4214138, %v803_v38  ;;  %v2958_v50 = vmul.f32 0.70710677, %v2942_v16  ;;  %v2961_v56 = vmul.f32 %v1310_v31, %v2769_v17 }
 0x1d2   : > { %2034 = vrcp.f32 %v679_v44  ;;  %v929_v48 = vmul.f32 %v2851_v63, %v897_v53  ;;  %v740_v39 = vmul.f32 1.0614054, %v2953_v13  ;;  %v2965_v6 = vadd.f32 1.0, %v1279_v41 }
 0x1d3   : > { %3646 = vst [vmem:[#allocation18_spill] sm:$0xff] %v2961_v56  ;;  %v898_v21 = vadd.f32 -0.28449672, %v866_v35  ;;  %v2968_v37 = vmul.f32 0.5, %v2830_v18  ;;  %v2971_v5 = vand.u32 2147483647, %v2958_v50  ;;  %2036 = vpow2.f32 %v1102_v36 }
 0x1d4   : > { %v2974_v2 = vmul.f32 0.70710677, %v2947_v22  ;;  %v2976_v44 = vpop.eup %2028  ;;  %v867_v17 = vmul.f32 %v2926_v51, %v835_v32  ;;  %v1104_v40 = vmul.f32 1.442695, %v1059_v33  ;;  %v772_v59 = vadd.f32 -1.4531521, %v740_v39 }
 0x1d5   : > { %v1184_v31 = vsub.f32 1.0, %v2955_v24  ;;  %v2981_v53 = vmul.f32 0.5, %v2849_v12  ;;  %v741_v18 = vmul.f32 1.0614054, %v2976_v44  ;;  %v648_v23 = vmul.f32 0.3275911, %v2971_v5 }
 0x1d6   : > { %3647 = vst [vmem:[#allocation19_spill] sm:$0xff] %v2974_v2  ;;  %vm1216_vm8 = vcmp.ge.f32.partialorder %v3649_v20, 0.0  ;;  %v961_v38 = vadd.f32 0.2548296, %v929_v48  ;;  %v930_v46 = vmul.f32 %v2906_v30, %v898_v21  ;;  %v804_v41 = vmul.f32 %v2953_v13, %v772_v59 }
 0x1d7   : > { %3648 = vst [vmem:[#allocation39_spill] sm:$0xff] %v2981_v53  ;;  %v1028_v35 = vsub.f32 0.0, %v2871_v34  ;;  %v2989_v36 = vpop.eup %2030  ;;  %v773_v33 = vadd.f32 -1.4531521, %v741_v18  ;;  %v1029_v24 = vsub.f32 0.0, %v2883_v45  ;;  %v680_v12 = vadd.f32 1.0, %v648_v23 }
 0x1d8   : > { %v2993_v32 = vand.u32 2147483647, %v2974_v2  ;;  %v899_v39 = vadd.f32 -0.28449672, %v867_v17  ;;  %2038 = vpow2.f32 %v1104_v40  ;;  %v836_v56 = vadd.f32 1.4214138, %v804_v41  ;;  %v2033_v15 = vpop.eup %2032 }
 0x1d9   : > { %v742_v48 = vmul.f32 1.0614054, %v2989_v36  ;;  %v1248_v21 = vsub.f32 0.0, %v1184_v31  ;;  %v805_v59 = vmul.f32 %v2976_v44, %v773_v33  ;;  %v1030_v43 = vsub.f32 0.0, %v2902_v29 }
 0x1da   : > { %2040 = vrcp.f32 %v680_v12  ;;  %v993_v18 = vmul.f32 %v2851_v63, %v961_v38  ;;  %v962_v0 = vadd.f32 0.2548296, %v930_v46  ;;  %v1060_v23 = vmul.f32 %v1028_v35, %v2871_v34 }
 0x1db   : > { %v774_v47 = vadd.f32 -1.4531521, %v742_v48  ;;  %v868_v17 = vmul.f32 %v2953_v13, %v836_v56  ;;  %v837_v40 = vadd.f32 1.4214138, %v805_v59  ;;  %v1061_v41 = vmul.f32 %v1029_v24, %v2883_v45 }
 0x1dc   : > { %v3000_v19 = vpop.eup %2034  ;;  %v649_v14 = vmul.f32 0.3275911, %v2993_v32  ;;  %v931_v33 = vmul.f32 %v2926_v51, %v899_v39  ;;  %v1031_v63 = vsub.f32 0.0, %v2933_v3  ;;  %v3011_v38 = vmul.f32 0.5, %v2864_v1 }
 0x1dd   : > { %v806_v25 = vmul.f32 %v2989_v36, %v774_v47  ;;  %v743_v12 = vmul.f32 1.0614054, %v3000_v19  ;;  %v869_v34 = vmul.f32 %v2976_v44, %v837_v40  ;;  %v1062_v56 = vmul.f32 %v1030_v43, %v2902_v29  ;;  %v2037_v35 = vpop.eup %2036 }
 0x1de   : > { %v681_v46 = vadd.f32 1.0, %v649_v14  ;;  %v1153_v45 = vmul.f32 %v2033_v15, %v993_v18  ;;  %v994_v24 = vmul.f32 %v2906_v30, %v962_v0  ;;  %v1280_v47 = vsel %vm1216_vm8, %v1184_v31, %v1248_v21 }
 0x1df   : > { %v838_v48 = vadd.f32 1.4214138, %v806_v25  ;;  %v775_v39 = vadd.f32 -1.4531521, %v743_v12  ;;  %v900_v59 = vadd.f32 -0.28449672, %v868_v17  ;;  %v1063_v29 = vmul.f32 %v1031_v63, %v2933_v3 }
 0x1e0   : > { %v1106_v60 = vmul.f32 1.442695, %v1060_v23  ;;  %v1108_v2 = vmul.f32 1.442695, %v1061_v41  ;;  %v963_v53 = vadd.f32 0.2548296, %v931_v33  ;;  %2042 = vrcp.f32 %v681_v46 }
 0x1e1   : > { %v870_v40 = vmul.f32 %v2989_v36, %v838_v48  ;;  %v807_v1 = vmul.f32 %v3000_v19, %v775_v39  ;;  %vm1217_vm9 = vcmp.ge.f32.partialorder %v2759_v9, 0.0  ;;  %v901_v14 = vadd.f32 -0.28449672, %v869_v34  ;;  %v3650_v3 = vld [vmem:[#allocation21_spill] sm:$0xff] }
 0x1e2   : > { %v1110_v15 = vmul.f32 1.442695, %v1062_v56  ;;  %v3022_v0 = vmul.f32 0.5, %v2893_v57  ;;  %v2039_v25 = vpop.eup %2038  ;;  %v1185_v30 = vsub.f32 1.0, %v1153_v45  ;;  %v1154_v43 = vmul.f32 %v2037_v35, %v994_v24 }
 0x1e3   : > { %v902_v31 = vadd.f32 -0.28449672, %v870_v40  ;;  %v839_v20 = vadd.f32 1.4214138, %v807_v1  ;;  %v1312_v18 = vadd.f32 1.0, %v1280_v47  ;;  %v932_v23 = vmul.f32 %v2953_v13, %v900_v59 }
 0x1e4   : > { %v3024_v21 = vpop.eup %2040  ;;  %2044 = vpow2.f32 %v1106_v60  ;;  %v3029_v17 = vadd.f32 %v3650_v3, %v2517_v54  ;;  %v995_v41 = vmul.f32 %v2926_v51, %v963_v53  ;;  %v1112_v33 = vmul.f32 1.442695, %v1063_v29 }
 0x1e5   : > { %2046 = vpow2.f32 %v1108_v2  ;;  %v871_v57 = vmul.f32 %v3000_v19, %v839_v20  ;;  %vm1218_vm10 = vcmp.ge.f32.partialorder %v2804_v52, 0.0  ;;  %v933_v12 = vmul.f32 %v2976_v44, %v901_v14 }
 0x1e6   : > { %v934_v63 = vmul.f32 %v2989_v36, %v902_v31  ;;  %2048 = vpow2.f32 %v1110_v15  ;;  %v744_v34 = vmul.f32 1.0614054, %v3024_v21  ;;  %v1249_v60 = vsub.f32 0.0, %v1185_v30  ;;  %v3651_v31 = vld [vmem:[#allocation22_spill] sm:$0xff] }
 0x1e7   : > { %v1186_v56 = vsub.f32 1.0, %v1154_v43  ;;  %v903_v46 = vadd.f32 -0.28449672, %v871_v57  ;;  %v1032_v35 = vsub.f32 0.0, %v2971_v5  ;;  %v3040_v51 = vmul.f32 %v2965_v6, %v2775_v27 }
 0x1e8   : > { %v964_v2 = vadd.f32 0.2548296, %v932_v23  ;;  %v776_v53 = vadd.f32 -1.4531521, %v744_v34  ;;  %v3043_v45 = vmul.f32 0.70710677, %v3029_v17  ;;  %v3046_v24 = vmul.f32 %v1312_v18, %v2826_v11 }
 0x1e9   : > { %v1155_v48 = vmul.f32 %v2039_v25, %v995_v41  ;;  %v935_v39 = vmul.f32 %v3000_v19, %v903_v46  ;;  %2050 = vpow2.f32 %v1112_v33  ;;  %v965_v47 = vadd.f32 0.2548296, %v933_v12 }
 0x1ea   : > { %v966_v59 = vadd.f32 0.2548296, %v934_v63  ;;  %v808_v40 = vmul.f32 %v3024_v21, %v776_v53  ;;  %v3051_v1 = vand.u32 2147483647, %v3043_v45  ;;  %v1281_v27 = vsel %vm1217_vm9, %v1185_v30, %v1249_v60  ;;  %v3059_v14 = vpop.eup %2042 }
 0x1eb   : > { %v1250_v6 = vsub.f32 0.0, %v1186_v56  ;;  %v3056_v29 = vmul.f32 0.5, %v2942_v16  ;;  %v1064_v11 = vmul.f32 %v1032_v35, %v2971_v5  ;;  %vm1219_vm11 = vcmp.ge.f32.partialorder %v2815_v55, 0.0 }
 0x1ec   : > { %v996_v15 = vmul.f32 %v2953_v13, %v964_v2  ;;  %v840_v25 = vadd.f32 1.4214138, %v808_v40  ;;  %v650_v43 = vmul.f32 0.3275911, %v3051_v1  ;;  %v3066_v20 = vadd.f32 %v3651_v31, %v2539_v10 }
 0x1ed   : > { %v1187_v9 = vsub.f32 1.0, %v1155_v48  ;;  %v967_v30 = vadd.f32 0.2548296, %v935_v39  ;;  %v745_v16 = vmul.f32 1.0614054, %v3059_v14  ;;  %v1033_v18 = vsub.f32 0.0, %v2993_v32 }
 0x1ee   : > { %v2045_v5 = vpop.eup %2044  ;;  %v997_v23 = vmul.f32 %v2976_v44, %v965_v47  ;;  %v998_v3 = vmul.f32 %v2989_v36, %v966_v59  ;;  %v872_v13 = vmul.f32 %v3024_v21, %v840_v25  ;;  %v682_v41 = vadd.f32 1.0, %v650_v43 }
 0x1ef   : > { %v2047_v57 = vpop.eup %2046  ;;  %v1313_v33 = vadd.f32 1.0, %v1281_v27  ;;  %v1282_v12 = vsel %vm1218_vm10, %v1186_v56, %v1250_v6  ;;  %v1114_v63 = vmul.f32 1.442695, %v1064_v11  ;;  %v777_v34 = vadd.f32 -1.4531521, %v745_v16 }
 0x1f0   : > { %v2049_v60 = vpop.eup %2048  ;;  %v1156_v46 = vmul.f32 %v2045_v5, %v996_v15  ;;  %v904_v35 = vadd.f32 -0.28449672, %v872_v13  ;;  %2052 = vrcp.f32 %v682_v41  ;;  %v3076_v2 = vmul.f32 0.70710677, %v3066_v20 }
 0x1f1   : > { %v1251_v44 = vsub.f32 0.0, %v1187_v9  ;;  %v999_v36 = vmul.f32 %v3000_v19, %v967_v30  ;;  %v809_v53 = vmul.f32 %v3059_v14, %v777_v34  ;;  %v1065_v48 = vmul.f32 %v1033_v18, %v2993_v32  ;;  %v3652_v19 = vld [vmem:[#allocation23_spill] sm:$0xff] }
 0x1f2   : > { %v1157_v39 = vmul.f32 %v2047_v57, %v997_v23  ;;  %v1158_v47 = vmul.f32 %v2049_v60, %v998_v3  ;;  %v3082_v52 = vmul.f32 0.5, %v2947_v22  ;;  %v3085_v56 = vand.u32 2147483647, %v3076_v2 }
 0x1f3   : > { %v2051_v59 = vpop.eup %2050  ;;  %v1314_v40 = vadd.f32 1.0, %v1282_v12  ;;  %vm1220_vm12 = vcmp.ge.f32.partialorder %v2845_v4, 0.0  ;;  %v936_v27 = vmul.f32 %v3024_v21, %v904_v35  ;;  %v841_v6 = vadd.f32 1.4214138, %v809_v53 }
 0x1f4   : > { %v3091_v11 = vadd.f32 %v3652_v19, %v2517_v54  ;;  %v3094_v32 = vmul.f32 %v1313_v33, %v2842_v58  ;;  %v1188_v15 = vsub.f32 1.0, %v1156_v46  ;;  %2054 = vpow2.f32 %v1114_v63 }
 0x1f5   : > { %v651_v22 = vmul.f32 0.3275911, %v3085_v56  ;;  %v1283_v25 = vsel %vm1219_vm11, %v1187_v9, %v1251_v44  ;;  %vm1221_vm13 = vcmp.ge.f32.partialorder %v2874_v62, 0.0  ;;  %vm1222_vm14 = vcmp.ge.f32.partialorder %v2887_v28, 0.0 }
 0x1f6   : > { %v1159_v43 = vmul.f32 %v2051_v59, %v999_v36  ;;  %v873_v31 = vmul.f32 %v3059_v14, %v841_v6  ;;  %v1116_v30 = vmul.f32 1.442695, %v1065_v48  ;;  %v1189_v16 = vsub.f32 1.0, %v1157_v39 }
 0x1f7   : > { %v1190_v18 = vsub.f32 1.0, %v1158_v47  ;;  %v683_v5 = vadd.f32 1.0, %v651_v22  ;;  %v3103_v58 = vmul.f32 0.70710677, %v3091_v11  ;;  %v3106_v23 = vmul.f32 %v1314_v40, %v2858_v61 }
 0x1f8   : > { %v968_v3 = vadd.f32 0.2548296, %v936_v27  ;;  %v905_v55 = vadd.f32 -0.28449672, %v873_v31  ;;  %v3110_v9 = vadd.f32 %v2705_v49, %v2539_v10  ;;  %v1315_v13 = vadd.f32 1.0, %v1283_v25 }
 0x1f9   : > { %v1252_v41 = vsub.f32 0.0, %v1188_v15  ;;  %vm1223_vm15 = vcmp.ge.f32.partialorder %v2924_v7, 0.0  ;;  %2056 = vrcp.f32 %v683_v5  ;;  %v3114_v57 = vand.u32 2147483647, %v3103_v58 }
 0x1fa   : > { %v1191_v33 = vsub.f32 1.0, %v1159_v43  ;;  %v937_v12 = vmul.f32 %v3059_v14, %v905_v55  ;;  %2058 = vpow2.f32 %v1116_v30  ;;  %v3119_v61 = vadd.f32 %v2711_v8, %v2517_v54  ;;  %v3121_v63 = vpop.eup %2052 }
 0x1fb   : > { %v1253_v49 = vsub.f32 0.0, %v1189_v16  ;;  %v1254_v34 = vsub.f32 0.0, %v1190_v18  ;;  %v652_v60 = vmul.f32 0.3275911, %v3114_v57  ;;  %v3125_v46 = vmul.f32 0.70710677, %v3110_v9 }
 0x1fc   : > { %v1000_v35 = vmul.f32 %v3024_v21, %v968_v3  ;;  %v3129_v44 = vmul.f32 0.5, %v3029_v17  ;;  %v746_v36 = vmul.f32 1.0614054, %v3121_v63  ;;  %v1034_v53 = vsub.f32 0.0, %v3051_v1 }
 0x1fd   : > { %v1284_v8 = vsel %vm1220_vm12, %v1188_v15, %v1252_v41  ;;  %v969_v48 = vadd.f32 0.2548296, %v937_v12  ;;  %v684_v39 = vadd.f32 1.0, %v652_v60  ;;  %v3136_v47 = vand.u32 2147483647, %v3125_v46 }
 0x1fe   : > { %v3139_v59 = vmul.f32 %v1315_v13, %v2921_v42  ;;  %v1255_v40 = vsub.f32 0.0, %v1191_v33  ;;  %v778_v21 = vadd.f32 -1.4531521, %v746_v36  ;;  %v3142_v17 = vmul.f32 0.70710677, %v3119_v61  ;;  %v2055_v27 = vpop.eup %2054 }
 0x1ff   : > { %v1285_v6 = vsel %vm1221_vm13, %v1189_v16, %v1253_v49  ;;  %v1286_v4 = vsel %vm1222_vm14, %v1190_v18, %v1254_v34  ;;  %2060 = vrcp.f32 %v684_v39  ;;  %v653_v19 = vmul.f32 0.3275911, %v3136_v47 }
 0x200   : > { %v1316_v15 = vadd.f32 1.0, %v1284_v8  ;;  %v1160_v22 = vmul.f32 %v2055_v27, %v1000_v35  ;;  %v810_v42 = vmul.f32 %v3121_v63, %v778_v21  ;;  %v1066_v25 = vmul.f32 %v1034_v53, %v3051_v1  ;;  %v3653_v35 = vld [vmem:[#allocation39_spill] sm:$0xff]  ;;  %v3654_v27 = vld [vmem:[#allocation24_spill] sm:$0xff] }
 0x201   : > { %v1001_v43 = vmul.f32 %v3059_v14, %v969_v48  ;;  %v3153_v31 = vmul.f32 0.5, %v3066_v20  ;;  %v685_v30 = vadd.f32 1.0, %v653_v19  ;;  %v3156_v62 = vand.u32 2147483647, %v3142_v17 }
 0x202   : > { %v1317_v28 = vadd.f32 1.0, %v1285_v6  ;;  %v1318_v16 = vadd.f32 1.0, %v1286_v4  ;;  %v1287_v18 = vsel %vm1223_vm15, %v1191_v33, %v1255_v40  ;;  %v842_v5 = vadd.f32 1.4214138, %v810_v42 }
 0x203   : > { %v3160_v3 = vpop.eup %2056  ;;  %vm1224_vm0 = vcmp.ge.f32.partialorder %v2958_v50, 0.0  ;;  %v1035_v1 = vsub.f32 0.0, %v3085_v56  ;;  %2062 = vrcp.f32 %v685_v30  ;;  %v654_v14 = vmul.f32 0.3275911, %v3156_v62 }
 0x204   : > { %v3167_v20 = vadd.f32 %v2717_v26, %v2539_v10  ;;  %v2059_v55 = vpop.eup %2058  ;;  %v3170_v13 = vmul.f32 %v1316_v15, %v2968_v37  ;;  %v1192_v7 = vsub.f32 1.0, %v1160_v22  ;;  %v1118_v41 = vmul.f32 1.442695, %v1066_v25  ;;  %v3655_v15 = vld [vmem:[#allocation19_spill] sm:$0xff] }
 0x205   : > { %v747_v33 = vmul.f32 1.0614054, %v3160_v3  ;;  %v1161_v12 = vmul.f32 %v2059_v55, %v1001_v43  ;;  %v1036_v49 = vsub.f32 0.0, %v3114_v57  ;;  %v686_v34 = vadd.f32 1.0, %v654_v14 }
 0x206   : > { %v3175_v60 = vmul.f32 0.70710677, %v3167_v20  ;;  %v3178_v36 = vmul.f32 %v1317_v28, %v3653_v35  ;;  %v1319_v26 = vadd.f32 1.0, %v1287_v18  ;;  %v874_v53 = vmul.f32 %v3121_v63, %v842_v5  ;;  %v3656_v5 = vld [vmem:[#allocation25_spill] sm:$0xff] }
 0x207   : > { %v779_v8 = vadd.f32 -1.4531521, %v747_v33  ;;  %v3182_v37 = vmul.f32 %v1318_v16, %v3011_v38  ;;  %v1067_v48 = vmul.f32 %v1035_v1, %v3085_v56  ;;  %2064 = vrcp.f32 %v686_v34 }
 0x208   : > { %v3186_v39 = vand.u32 2147483647, %v3175_v60  ;;  %v1256_v40 = vsub.f32 0.0, %v1192_v7  ;;  %2066 = vpow2.f32 %v1118_v41  ;;  %v3191_v6 = vadd.f32 %v3654_v27, %v2517_v54 }
 0x209   : > { %v811_v21 = vmul.f32 %v3160_v3, %v779_v8  ;;  %v3193_v4 = vpop.eup %2060  ;;  %v1193_v19 = vsub.f32 1.0, %v1161_v12  ;;  %vm1225_vm1 = vcmp.ge.f32.partialorder %v3655_v15, 0.0  ;;  %v3197_v38 = vmul.f32 0.5, %v3091_v11 }
 0x20a   : > { %v1068_v56 = vmul.f32 %v1036_v49, %v3114_v57  ;;  %v655_v22 = vmul.f32 0.3275911, %v3186_v39  ;;  %v3202_v42 = vmul.f32 %v1319_v26, %v3022_v0  ;;  %v906_v25 = vadd.f32 -0.28449672, %v874_v53 }
 0x20b   : > { %v843_v43 = vadd.f32 1.4214138, %v811_v21  ;;  %v748_v30 = vmul.f32 1.0614054, %v3193_v4  ;;  %v1120_v28 = vmul.f32 1.442695, %v1067_v48  ;;  %v3210_v11 = vadd.f32 %v3656_v5, %v2539_v10 }
 0x20c   : > { %v687_v16 = vadd.f32 1.0, %v655_v22  ;;  %v3206_v18 = vmul.f32 0.70710677, %v3191_v6  ;;  %v1288_v57 = vsel %vm1224_vm0, %v1192_v7, %v1256_v40  ;;  %v3216_v14 = vmul.f32 0.5, %v3110_v9 }
 0x20d   : > { %v875_v1 = vmul.f32 %v3160_v3, %v843_v43  ;;  %v780_v0 = vadd.f32 -1.4531521, %v748_v30  ;;  %v3218_v55 = vpop.eup %2062  ;;  %v1122_v41 = vmul.f32 1.442695, %v1068_v56  ;;  %v1037_v33 = vsub.f32 0.0, %v3136_v47 }
 0x20e   : > { %2068 = vrcp.f32 %v687_v16  ;;  %v624_v12 = vand.u32 2147483647, %v3206_v18  ;;  %v1257_v49 = vsub.f32 0.0, %v1193_v19  ;;  %v938_v34 = vmul.f32 %v3121_v63, %v906_v25 }
 0x20f   : > { %v812_v50 = vmul.f32 %v3193_v4, %v780_v0  ;;  %v749_v7 = vmul.f32 1.0614054, %v3218_v55  ;;  %v907_v35 = vadd.f32 -0.28449672, %v875_v1  ;;  %2070 = vpow2.f32 %v1120_v28 }
 0x210   : > { %v656_v26 = vmul.f32 0.3275911, %v624_v12  ;;  %v3226_v9 = vmul.f32 0.70710677, %v3210_v11  ;;  %v3229_v48 = vmul.f32 0.5, %v3119_v61  ;;  %v1038_v40 = vsub.f32 0.0, %v3156_v62 }
 0x211   : > { %v844_v53 = vadd.f32 1.4214138, %v812_v50  ;;  %v781_v8 = vadd.f32 -1.4531521, %v749_v7  ;;  %v3232_v21 = vpop.eup %2064  ;;  %v1320_v27 = vadd.f32 1.0, %v1288_v57  ;;  %v1069_v56 = vmul.f32 %v1037_v33, %v3136_v47 }
 0x212   : > { %v688_v22 = vadd.f32 1.0, %v656_v26  ;;  %v3236_v25 = vand.u32 2147483647, %v3226_v9  ;;  %v2067_v43 = vpop.eup %2066  ;;  %v1289_v30 = vsel %vm1225_vm1, %v1193_v19, %v1257_v49  ;;  %v970_v28 = vadd.f32 0.2548296, %v938_v34 }
 0x213   : > { %v876_v16 = vmul.f32 %v3193_v4, %v844_v53  ;;  %v813_v61 = vmul.f32 %v3218_v55, %v781_v8  ;;  %v939_v5 = vmul.f32 %v3160_v3, %v907_v35  ;;  %v750_v1 = vmul.f32 1.0614054, %v3232_v21 }
 0x214   : > { %2072 = vrcp.f32 %v688_v22  ;;  %v657_v47 = vmul.f32 0.3275911, %v3236_v25  ;;  %v1070_v33 = vmul.f32 %v1038_v40, %v3156_v62  ;;  %v3247_v15 = vmul.f32 %v1320_v27, %v3056_v29  ;;  %v3658_v62 = vld [vmem:[#allocation27_spill] sm:$0xff] }
 0x215   : > { %v908_v57 = vadd.f32 -0.28449672, %v876_v16  ;;  %2074 = vpow2.f32 %v1122_v41  ;;  %v845_v0 = vadd.f32 1.4214138, %v813_v61  ;;  %v1124_v19 = vmul.f32 1.442695, %v1069_v56 }
 0x216   : > { %3657 = vst [vmem:[#allocation20_spill] sm:$0xff] %v3247_v15  ;;  %v782_v49 = vadd.f32 -1.4531521, %v750_v1  ;;  %v689_v34 = vadd.f32 1.0, %v657_v47  ;;  %v1321_v50 = vadd.f32 1.0, %v1289_v30  ;;  %v1002_v7 = vmul.f32 %v3121_v63, %v970_v28 }
 0x217   : > { %v877_v35 = vmul.f32 %v3218_v55, %v845_v0  ;;  %v1040_v26 = vsub.f32 0.0, %v624_v12  ;;  %v971_v8 = vadd.f32 0.2548296, %v939_v5  ;;  %v3256_v40 = vadd.f32 %v3658_v62, %v2517_v54 }
 0x218   : > { %v3251_v53 = vpop.eup %2068  ;;  %v814_v41 = vmul.f32 %v3232_v21, %v782_v49  ;;  %2076 = vrcp.f32 %v689_v34  ;;  %v940_v29 = vmul.f32 %v3193_v4, %v908_v57  ;;  %v1126_v56 = vmul.f32 1.442695, %v1070_v33 }
 0x219   : > { %3659 = vst [vmem:[#allocation21_spill] sm:$0xff] %v3256_v40  ;;  %v909_v27 = vadd.f32 -0.28449672, %v877_v35  ;;  %v1039_v22 = vsub.f32 0.0, %v3186_v39  ;;  %v2071_v63 = vpop.eup %2070  ;;  %2078 = vpow2.f32 %v1124_v19  ;;  %v3261_v28 = vmul.f32 0.5, %v3167_v20 }
 0x21a   : > { %v846_v30 = vadd.f32 1.4214138, %v814_v41  ;;  %v751_v16 = vmul.f32 1.0614054, %v3251_v53  ;;  %v3265_v61 = vmul.f32 %v1321_v50, %v3082_v52  ;;  %v1162_v5 = vmul.f32 %v2067_v43, %v1002_v7 }
 0x21b   : > { %v941_v1 = vmul.f32 %v3218_v55, %v909_v27  ;;  %v1072_v47 = vmul.f32 %v1040_v26, %v624_v12  ;;  %v1003_v57 = vmul.f32 %v3160_v3, %v971_v8  ;;  %v3271_v19 = vmul.f32 0.70710677, %v3256_v40 }
 0x21c   : > { %v878_v0 = vmul.f32 %v3232_v21, %v846_v30  ;;  %v783_v33 = vadd.f32 -1.4531521, %v751_v16  ;;  %v972_v49 = vadd.f32 0.2548296, %v940_v29  ;;  %2080 = vpow2.f32 %v1126_v56 }
 0x21d   : > { %3660 = vst [vmem:[#allocation22_spill] sm:$0xff] %v3271_v19  ;;  %v1071_v20 = vmul.f32 %v1039_v22, %v3186_v39  ;;  %v1041_v34 = vsub.f32 0.0, %v3236_v25  ;;  %v973_v43 = vadd.f32 0.2548296, %v941_v1  ;;  %v3279_v3 = vand.u32 2147483647, %v3271_v19 }
 0x21e   : > { %v3275_v52 = vpop.eup %2072  ;;  %v910_v50 = vadd.f32 -0.28449672, %v878_v0  ;;  %v815_v12 = vmul.f32 %v3251_v53, %v783_v33  ;;  %v1194_v35 = vsub.f32 1.0, %v1162_v5  ;;  %vm1226_vm2 = vcmp.ge.f32.partialorder %v3043_v45, 0.0  ;;  %v3661_v0 = vld [vmem:[#allocation26_spill] sm:$0xff] }
 0x21f   : > { %v2075_v7 = vpop.eup %2074  ;;  %v3283_v26 = vmul.f32 0.5, %v3191_v6  ;;  %v752_v39 = vmul.f32 1.0614054, %v3275_v52  ;;  %v3287_v8 = vmul.f32 0.5, %v3210_v11  ;;  %v1163_v41 = vmul.f32 %v2071_v63, %v1003_v57 }
 0x220   : > { %v847_v62 = vadd.f32 1.4214138, %v815_v12  ;;  %v1130_v29 = vmul.f32 1.442695, %v1072_v47  ;;  %v658_v27 = vmul.f32 0.3275911, %v3279_v3  ;;  %v1004_v56 = vmul.f32 %v3193_v4, %v972_v49 }
 0x221   : > { %v942_v22 = vmul.f32 %v3232_v21, %v910_v50  ;;  %v784_v30 = vadd.f32 -1.4531521, %v752_v39  ;;  %v1073_v16 = vmul.f32 %v1041_v34, %v3236_v25  ;;  %v1005_v6 = vmul.f32 %v3218_v55, %v973_v43  ;;  %v3662_v34 = vld [vmem:[#allocation29_spill] sm:$0xff] }
 0x222   : > { %v3293_v5 = vpop.eup %2076  ;;  %v879_v1 = vmul.f32 %v3251_v53, %v847_v62  ;;  %v690_v11 = vadd.f32 1.0, %v658_v27  ;;  %v727_v63 = vmul.f32 1.0614054, %v3661_v0  ;;  %v1258_v57 = vsub.f32 0.0, %v1194_v35 }
 0x223   : > { %vm1227_vm3 = vcmp.ge.f32.partialorder %v3076_v2, 0.0  ;;  %v1128_v47 = vmul.f32 1.442695, %v1071_v20  ;;  %v816_v4 = vmul.f32 %v3275_v52, %v784_v30  ;;  %v753_v33 = vmul.f32 1.0614054, %v3293_v5  ;;  %v2079_v49 = vpop.eup %2078 }
 0x224   : > { %v1195_v50 = vsub.f32 1.0, %v1163_v41  ;;  %v911_v25 = vadd.f32 -0.28449672, %v879_v1  ;;  %2082 = vrcp.f32 %v690_v11  ;;  %v729_v12 = vmul.f32 1.0614054, %v3662_v34 }
 0x225   : > { %v974_v55 = vadd.f32 0.2548296, %v942_v22  ;;  %v848_v43 = vadd.f32 1.4214138, %v816_v4  ;;  %2084 = vpow2.f32 %v1130_v29  ;;  %v785_v39 = vadd.f32 -1.4531521, %v753_v33 }
 0x226   : > { %v1164_v62 = vmul.f32 %v2075_v7, %v1004_v56  ;;  %v1165_v27 = vmul.f32 %v2079_v49, %v1005_v6  ;;  %v1132_v40 = vmul.f32 1.442695, %v1073_v16  ;;  %v759_v19 = vadd.f32 -1.4531521, %v727_v63  ;;  %v2081_v15 = vpop.eup %2080  ;;  %v3663_v29 = vld [vmem:[#allocation34_spill] sm:$0xff] }
 0x227   : > { %v943_v20 = vmul.f32 %v3251_v53, %v911_v25  ;;  %2086 = vpow2.f32 %v1128_v47  ;;  %v880_v30 = vmul.f32 %v3275_v52, %v848_v43  ;;  %v817_v41 = vmul.f32 %v3293_v5, %v785_v39 }
 0x228   : > { %v1290_v1 = vsel %vm1226_vm2, %v1194_v35, %v1258_v57  ;;  %v1259_v11 = vsub.f32 0.0, %v1195_v50  ;;  %v761_v22 = vadd.f32 -1.4531521, %v729_v12  ;;  %v3309_v4 = vadd.f32 %v3663_v29, %v2539_v10 }
 0x229   : > { %vm1228_vm4 = vcmp.ge.f32.partialorder %v3103_v58, 0.0  ;;  %v1006_v7 = vmul.f32 %v3232_v21, %v974_v55  ;;  %v912_v56 = vadd.f32 -0.28449672, %v880_v30  ;;  %v849_v16 = vadd.f32 1.4214138, %v817_v41 }
 0x22a   : > { %v791_v6 = vmul.f32 %v3661_v0, %v759_v19  ;;  %v1196_v63 = vsub.f32 1.0, %v1164_v62  ;;  %v1197_v47 = vsub.f32 1.0, %v1165_v27  ;;  %vm1229_vm5 = vcmp.ge.f32.partialorder %v3125_v46, 0.0 }
 0x22b   : > { %2088 = vpow2.f32 %v1132_v40  ;;  %v793_v45 = vmul.f32 %v3662_v34, %v761_v22  ;;  %v975_v35 = vadd.f32 0.2548296, %v943_v20  ;;  %v944_v57 = vmul.f32 %v3275_v52, %v912_v56 }
 0x22c   : > { %v881_v33 = vmul.f32 %v3293_v5, %v849_v16  ;;  %v823_v49 = vadd.f32 1.4214138, %v791_v6  ;;  %v1322_v25 = vadd.f32 1.0, %v1290_v1  ;;  %v1291_v21 = vsel %vm1227_vm3, %v1195_v50, %v1259_v11 }
 0x22d   : > { %v825_v12 = vadd.f32 1.4214138, %v793_v45  ;;  %v3321_v19 = vmul.f32 0.70710677, %v3309_v4  ;;  %v1166_v55 = vmul.f32 %v2081_v15, %v1006_v7  ;;  %v976_v43 = vadd.f32 0.2548296, %v944_v57 }
 0x22e   : > { %v913_v39 = vadd.f32 -0.28449672, %v881_v33  ;;  %v855_v40 = vmul.f32 %v3661_v0, %v823_v49  ;;  %v3324_v62 = vpop.eup %2082  ;;  %v1260_v27 = vsub.f32 0.0, %v1196_v63  ;;  %v1261_v20 = vsub.f32 0.0, %v1197_v47 }
 0x22f   : > { %v857_v30 = vmul.f32 %v3662_v34, %v825_v12  ;;  %v3328_v41 = vand.u32 2147483647, %v3321_v19  ;;  %v2085_v2 = vpop.eup %2084  ;;  %v1007_v50 = vmul.f32 %v3251_v53, %v975_v35  ;;  %v1008_v1 = vmul.f32 %v3275_v52, %v976_v43 }
 0x230   : > { %v945_v15 = vmul.f32 %v3293_v5, %v913_v39  ;;  %v754_v11 = vmul.f32 1.0614054, %v3324_v62  ;;  %v3335_v22 = vmul.f32 %v1322_v25, %v3129_v44  ;;  %v1323_v29 = vadd.f32 1.0, %v1291_v21  ;;  %v3664_v39 = vld [vmem:[#allocation30_spill] sm:$0xff] }
 0x231   : > { %vm1230_vm6 = vcmp.ge.f32.partialorder %v3142_v17, 0.0  ;;  %v887_v7 = vadd.f32 -0.28449672, %v855_v40  ;;  %v889_v56 = vadd.f32 -0.28449672, %v857_v30  ;;  %v2087_v16 = vpop.eup %2086  ;;  %v1198_v6 = vsub.f32 1.0, %v1166_v55 }
 0x232   : > { %v1168_v45 = vmul.f32 %v2085_v2, %v1008_v1  ;;  %v977_v57 = vadd.f32 0.2548296, %v945_v15  ;;  %v659_v53 = vmul.f32 0.3275911, %v3328_v41  ;;  %v1292_v52 = vsel %vm1228_vm4, %v1196_v63, %v1260_v27  ;;  %v3665_v40 = vld [vmem:[#allocation31_spill] sm:$0xff]  ;;  %v3666_v30 = vld [vmem:[#allocation13_spill] sm:$0xff] }
 0x233   : > { %v1042_v35 = vsub.f32 0.0, %v3279_v3  ;;  %v919_v33 = vmul.f32 %v3661_v0, %v887_v7  ;;  %v921_v44 = vmul.f32 %v3662_v34, %v889_v56  ;;  %v1293_v49 = vsel %vm1229_vm5, %v1197_v47, %v1261_v20  ;;  %v3667_v2 = vld [vmem:[#allocation14_spill] sm:$0xff] }
 0x234   : > { %v1167_v25 = vmul.f32 %v2087_v16, %v1007_v50  ;;  %v1009_v21 = vmul.f32 %v3293_v5, %v977_v57  ;;  %v786_v12 = vadd.f32 -1.4531521, %v754_v11  ;;  %vm1232_vm7 = vcmp.ge.f32.partialorder %v3206_v18, 0.0  ;;  %v3668_v16 = vld [vmem:[#allocation36_spill] sm:$0xff] }
 0x235   : > { %v2089_v55 = vpop.eup %2088  ;;  %vm1233_vm8 = vcmp.ge.f32.partialorder %v3226_v9, 0.0  ;;  %v951_v58 = vadd.f32 0.2548296, %v919_v33  ;;  %v953_v63 = vadd.f32 0.2548296, %v921_v44  ;;  %v691_v43 = vadd.f32 1.0, %v659_v53 }
 0x236   : > { %v1366_v27 = vpack.c.bf16 %v3665_v40, %v3664_v39  ;;  %vm1207_vm9 = vcmp.ge.f32.partialorder %v3666_v30, 0.0  ;;  %vm1209_vm10 = vcmp.ge.f32.partialorder %v3667_v2, 0.0  ;;  %v1324_v46 = vadd.f32 1.0, %v1292_v52  ;;  %v3669_v52 = vld [vmem:[#allocation28_spill] sm:$0xff]  ;;  %v3675_v2 = vld [vmem:[#allocation37_spill] sm:$0xff] }
 0x237   : > { %v1262_v47 = vsub.f32 0.0, %v1198_v6  ;;  %v1200_v20 = vsub.f32 1.0, %v1168_v45  ;;  %v1169_v5 = vmul.f32 %v2089_v55, %v1009_v21  ;;  %vm1231_vm11 = vcmp.ge.f32.partialorder %v3175_v60, 0.0 }
 0x238   : > { %v1074_v50 = vmul.f32 %v1042_v35, %v3279_v3  ;;  %v983_v1 = vmul.f32 %v3661_v0, %v951_v58  ;;  %v985_v15 = vmul.f32 %v3662_v34, %v953_v63  ;;  %2090 = vrcp.f32 %v691_v43  ;;  %v3670_v3 = vld [vmem:[#allocation32_spill] sm:$0xff] }
 0x239   : > { %v1325_v11 = vadd.f32 1.0, %v1293_v49  ;;  %v1199_v7 = vsub.f32 1.0, %v1167_v25  ;;  %v1201_v56 = vsub.f32 1.0, %v1169_v5  ;;  %v3359_v57 = vadd.f32 %v3668_v16, %v2517_v54 }
 0x23a   : > { %v3362_v53 = vmul.f32 %v1323_v29, %v3153_v31  ;;  %v818_v45 = vmul.f32 %v3324_v62, %v786_v12  ;;  %v1143_v33 = vmul.f32 %v3669_v52, %v983_v1  ;;  %v1145_v35 = vmul.f32 %v3670_v3, %v985_v15  ;;  %v3671_v29 = vld [vmem:[#allocation15_spill] sm:$0xff]  ;;  %v3673_v1 = vld [vmem:[#allocation38_spill] sm:$0xff]  ;;  %v3674_v3 = vld [vmem:[#allocation33_spill] sm:$0xff] }
 0x23b   : > { %v1294_v0 = vsel %vm1230_vm6, %v1198_v6, %v1262_v47  ;;  %v1264_v34 = vsub.f32 0.0, %v1200_v20  ;;  %v1265_v44 = vsub.f32 0.0, %v1201_v56  ;;  %v3370_v49 = vmul.f32 0.70710677, %v3359_v57 }
 0x23c   : > { %v3373_v54 = vmul.f32 %v1324_v46, %v3197_v38  ;;  %v1175_v25 = vsub.f32 1.0, %v1143_v33  ;;  %v1177_v31 = vsub.f32 1.0, %v1145_v35  ;;  %v3377_v21 = vadd.f32 %v3671_v29, %v2539_v10  ;;  %v3672_v10 = vld [vmem:[#allocation35_spill] sm:$0xff] }
 0x23d   : > { %v3380_v12 = vmul.f32 %v1325_v11, %v3216_v14  ;;  %v1263_v55 = vsub.f32 0.0, %v1199_v7  ;;  %v1134_v17 = vmul.f32 1.442695, %v1074_v50  ;;  %v628_v6 = vand.u32 2147483647, %v3370_v49 }
 0x23e   : > { %v1326_v58 = vadd.f32 1.0, %v1294_v0  ;;  %v850_v63 = vadd.f32 1.4214138, %v818_v45  ;;  %v1239_v43 = vsub.f32 0.0, %v1175_v25  ;;  %v1241_v47 = vsub.f32 0.0, %v1177_v31 }
 0x23f   : > { %v1296_v38 = vsel %vm1232_vm7, %v1200_v20, %v1264_v34  ;;  %v1297_v46 = vsel %vm1233_vm8, %v1201_v56, %v1265_v44  ;;  %v660_v5 = vmul.f32 0.3275911, %v628_v6  ;;  %v1369_v15 = vpack.c.bf16 %v3673_v1, %v3672_v10  ;;  %v3676_v34 = vld [vmem:[#allocation16_spill] sm:$0xff]  ;;  %v3678_v1 = vld [vmem:[#allocation18_spill] sm:$0xff] }
 0x240   : > { %v1271_v14 = vsel %vm1207_vm9, %v1175_v25, %v1239_v43  ;;  %v1273_v50 = vsel %vm1209_vm10, %v1177_v31, %v1241_v47  ;;  %v1043_v11 = vsub.f32 0.0, %v3328_v41  ;;  %v3395_v16 = vmul.f32 0.70710677, %v3377_v21  ;;  %v3677_v25 = vld [vmem:[#allocation17_spill] sm:$0xff] }
 0x241   : > { %v1295_v18 = vsel %vm1231_vm11, %v1199_v7, %v1263_v55  ;;  %v1303_v9 = vadd.f32 1.0, %v1271_v14  ;;  %v1305_v20 = vadd.f32 1.0, %v1273_v50  ;;  %v692_v56 = vadd.f32 1.0, %v660_v5 }
 0x242   : > { %v3399_v45 = vpop.eup %2090  ;;  %v1328_v52 = vadd.f32 1.0, %v1296_v38  ;;  %v1329_v33 = vadd.f32 1.0, %v1297_v46  ;;  %v629_v30 = vand.u32 2147483647, %v3395_v16  ;;  %v1368_v35 = vpack.c.bf16 %v3675_v2, %v3674_v3 }
 0x243   : > { %v882_v0 = vmul.f32 %v3324_v62, %v850_v63  ;;  %v1335_v44 = vmul.f32 %v1303_v9, %v3676_v34  ;;  %v1337_v31 = vmul.f32 %v1305_v20, %v3677_v25  ;;  %v755_v60 = vmul.f32 1.0614054, %v3399_v45 }
 0x244   : > { %v3409_v7 = vmul.f32 %v1326_v58, %v3229_v48  ;;  %v1327_v29 = vadd.f32 1.0, %v1295_v18  ;;  %2092 = vrcp.f32 %v692_v56  ;;  %v661_v55 = vmul.f32 0.3275911, %v629_v30 }
 0x245   : > { %v1367_v43 = vpack.c.bf16 %v1337_v31, %v1335_v44  ;;  %v787_v47 = vadd.f32 -1.4531521, %v755_v60  ;;  %v1075_v38 = vmul.f32 %v1043_v11, %v3328_v41  ;;  %v1371_v46 = vpack.c.bf16 %v3094_v32, %v3040_v51 }
 0x246   : > { %v3415_v63 = vmul.f32 %v1328_v52, %v3283_v26  ;;  %v3418_v5 = vmul.f32 %v1329_v33, %v3287_v8  ;;  %v693_v10 = vadd.f32 1.0, %v661_v55  ;;  %v1370_v48 = vpack.c.bf16 %v3046_v24, %v3678_v1  ;;  %v3679_v26 = vld [vmem:[#allocation20_spill] sm:$0xff] }
 0x247   : > { %v914_v58 = vadd.f32 -0.28449672, %v882_v0  ;;  %1549 = vmatprep.mubr.bf16.mxu1 %v1367_v43  ;;  %v819_v14 = vmul.f32 %v3399_v45, %v787_v47  ;;  %v1373_v41 = vpack.c.bf16 %v3178_v36, %v3139_v59  ;;  %v1372_v51 = vpack.c.bf16 %v3170_v13, %v3106_v23 }
 0x248   : > { %v3428_v32 = vmul.f32 %v1327_v29, %v3261_v28  ;;  %1550 = vmatmul.mubr.bf16.vlgmr.msra.gmra.mrb[0].mxu1 %v1366_v27  ;;  %2094 = vrcp.f32 %v693_v10  ;;  %v1375_v24 = vpack.c.bf16 %v3265_v61, %v3202_v42  ;;  %v1374_v8 = vpack.c.bf16 %v3679_v26, %v3182_v37 }
 0x249   : > { %v851_v50 = vadd.f32 1.4214138, %v819_v14  ;;  %1557 = vmatprep.mubr.bf16.mxu1 %v1369_v15  ;;  %v1377_v59 = vpack.c.bf16 %v3380_v12, %v3362_v53  ;;  %v1376_v23 = vpack.c.bf16 %v3373_v54, %v3335_v22  ;;  %v1044_v13 = vsub.f32 0.0, %v628_v6 }
 0x24a   : > { %v1379_v36 = vpack.c.bf16 %v3418_v5, %v3428_v32  ;;  %v1378_v28 = vpack.c.bf16 %v3415_v63, %v3409_v7  ;;  %v946_v42 = vmul.f32 %v3324_v62, %v914_v58  ;;  %2096 = vpow2.f32 %v1134_v17 }
 0x24b   : > { %v883_v61 = vmul.f32 %v3399_v45, %v851_v50  ;;  %v1136_v39 = vmul.f32 1.442695, %v1075_v38  ;;  %v1076_v15 = vmul.f32 %v1044_v13, %v628_v6  ;;  %v1045_v11 = vsub.f32 0.0, %v629_v30 }
 0x24c   : > { %v978_v18 = vadd.f32 0.2548296, %v946_v42  ;;  %vm1235_vm13 = vcmp.ge.f32.partialorder %v3321_v19, 0.0  ;;  %vm1236_vm14 = vcmp.ge.f32.partialorder %v3370_v49, 0.0  ;;  %vm1237_vm15 = vcmp.ge.f32.partialorder %v3395_v16, 0.0 }
 0x24d   : > { %v915_v40 = vadd.f32 -0.28449672, %v883_v61  ;;  %2098 = vpow2.f32 %v1136_v39  ;;  %v1138_v33 = vmul.f32 1.442695, %v1076_v15  ;;  %v1077_v3 = vmul.f32 %v1045_v11, %v629_v30 }
 0x24e   : > { %v2093_v27 = vpop.eup %2092  ;;  %v1010_v2 = vmul.f32 %v3324_v62, %v978_v18 }
 0x24f   : > { %v947_v9 = vmul.f32 %v3399_v45, %v915_v40  ;;  %v756_v20 = vmul.f32 1.0614054, %v2093_v27  ;;  %2100 = vpow2.f32 %v1138_v33  ;;  %v1140_v31 = vmul.f32 1.442695, %v1077_v3  ;;  %v3681_v3 = vld [vmem:[#allocation21_spill] sm:$0xff] }
 0x250   : > { %1558 = vmatmul.mubr.bf16.gmra.mrb[4].mxu1 %v1368_v35 }
 0x251   : > { %v788_v56 = vadd.f32 -1.4531521, %v756_v20  ;;  %1565 = vmatprep.mubr.bf16.mxu1 %v1371_v46  ;;  %v979_v0 = vadd.f32 0.2548296, %v947_v9  ;;  %2102 = vpow2.f32 %v1140_v31 }
 0x252   : > { %v2095_v52 = vpop.eup %2094 }
 0x253   : > { %v820_v17 = vmul.f32 %v2093_v27, %v788_v56  ;;  %v757_v34 = vmul.f32 1.0614054, %v2095_v52  ;;  %v1011_v29 = vmul.f32 %v3399_v45, %v979_v0 }
 0x254   : > { %v2097_v6 = vpop.eup %2096 }
 0x255   : > { %v852_v44 = vadd.f32 1.4214138, %v820_v17  ;;  %v789_v25 = vadd.f32 -1.4531521, %v757_v34  ;;  %v1170_v60 = vmul.f32 %v2097_v6, %v1010_v2  ;;  %v562_v2 = vmul.f32 0.5, %v3681_v3 }
 0x257   : > { %v884_v55 = vmul.f32 %v2093_v27, %v852_v44  ;;  %v821_v35 = vmul.f32 %v2095_v52, %v789_v25  ;;  %v2099_v30 = vpop.eup %2098  ;;  %v1202_v62 = vsub.f32 1.0, %v1170_v60  ;;  %v563_v44 = vmul.f32 0.5, %v3309_v4 }
 0x258   : > { %1566 = vmatmul.mubr.bf16.gmra.mrb[8].mxu1 %v1370_v48  ;;  %v1171_v38 = vmul.f32 %v2099_v30, %v1011_v29  ;;  %v3680_v48 = vld [vmem:[#allocation22_spill] sm:$0xff] }
 0x259   : > { %v916_v43 = vadd.f32 -0.28449672, %v884_v55  ;;  %v853_v47 = vadd.f32 1.4214138, %v821_v35  ;;  %1573 = vmatprep.mubr.bf16.mxu1 %v1373_v41  ;;  %v1266_v14 = vsub.f32 0.0, %v1202_v62  ;;  %v2101_v61 = vpop.eup %2100  ;;  %vm1234_vm12 = vcmp.ge.f32.partialorder %v3680_v48, 0.0 }
 0x25a   : > { %v1203_v50 = vsub.f32 1.0, %v1171_v38 }
 0x25b   : > { %v948_v46 = vmul.f32 %v2093_v27, %v916_v43  ;;  %v885_v10 = vmul.f32 %v2095_v52, %v853_v47  ;;  %v1298_v41 = vsel %vm1234_vm12, %v1202_v62, %v1266_v14  ;;  %v2103_v18 = vpop.eup %2102 }
 0x25c   : > { %v1267_v40 = vsub.f32 0.0, %v1203_v50  ;;  %v1330_v56 = vadd.f32 1.0, %v1298_v41 }
 0x25d   : > { %v980_v1 = vadd.f32 0.2548296, %v948_v46  ;;  %v917_v58 = vadd.f32 -0.28449672, %v885_v10 }
 0x25e   : > { %v1362_v19 = vmul.f32 %v1330_v56, %v562_v2 }
 0x25f   : > { %v1012_v13 = vmul.f32 %v2093_v27, %v980_v1  ;;  %v949_v42 = vmul.f32 %v2095_v52, %v917_v58  ;;  %v1299_v27 = vsel %vm1235_vm13, %v1203_v50, %v1267_v40 }
 0x260   : > { %1574 = vmatmul.mubr.bf16.gmra.mrb[12].mxu1 %v1372_v51  ;;  %v1331_v17 = vadd.f32 1.0, %v1299_v27 }
 0x261   : > { %v1172_v45 = vmul.f32 %v2101_v61, %v1012_v13  ;;  %v981_v39 = vadd.f32 0.2548296, %v949_v42  ;;  %1581 = vmatprep.mubr.bf16.mxu1 %v1375_v24  ;;  %v564_v24 = vmul.f32 0.5, %v3359_v57  ;;  %v565_v57 = vmul.f32 0.5, %v3377_v21  ;;  %v3476_v21 = vld [vmem:[%s3581_s4] ss:$0 sm:$0xff] }
 0x262   : > { %v1363_v31 = vmul.f32 %v1331_v17, %v563_v44 }
 0x263   : > { %v1204_v15 = vsub.f32 1.0, %v1172_v45  ;;  %v1013_v11 = vmul.f32 %v2095_v52, %v981_v39 }
 0x265   : > { %v1268_v9 = vsub.f32 0.0, %v1204_v15  ;;  %v1173_v20 = vmul.f32 %v2103_v18, %v1013_v11 }
 0x267   : > { %v1300_v33 = vsel %vm1236_vm14, %v1204_v15, %v1268_v9  ;;  %v1205_v51 = vsub.f32 1.0, %v1173_v20 }
 0x268   : > { %v1332_v0 = vadd.f32 1.0, %v1300_v33  ;;  %1582 = vmatmul.mubr.bf16.gmra.mrb[16].mxu1 %v1374_v8 }
 0x269   : > { %v1269_v52 = vsub.f32 0.0, %v1205_v51  ;;  %1589 = vmatprep.mubr.bf16.mxu1 %v1377_v59 }
 0x26a   : > { %v1364_v49 = vmul.f32 %v1332_v0, %v564_v24 }
 0x26b   : > { %v1301_v34 = vsel %vm1237_vm15, %v1205_v51, %v1269_v52 }
 0x26c   : > { %v1333_v25 = vadd.f32 1.0, %v1301_v34  ;;  %v1380_v6 = vpack.c.bf16 %v1364_v49, %v1362_v19 }
 0x26e   : > { %v1365_v37 = vmul.f32 %v1333_v25, %v565_v57 }
 0x270   : > { %1590 = vmatmul.mubr.bf16.gmra.mrb[20].mxu1 %v1376_v23  ;;  %v1381_v53 = vpack.c.bf16 %v1365_v37, %v1363_v31 }
 0x271   : > { %1597 = vmatprep.mubr.bf16.mxu1 %v1379_v36 }
 0x278   : > { %1598 = vmatmul.mubr.bf16.gmra.mrb[24].mxu1 %v1378_v28 }
 0x279   : > { %1605 = vmatprep.mubr.bf16.mxu1 %v1381_v53 }
 0x280   : > { %1606 = vmatmul.mubr.bf16.gmra.mrb[28].mxu1 %v1380_v6 }
 0x31b   : > { %v1819_v4 = vpop.f32.mrb[0].mxu1 }
 0x31c   : > { %v1820_v12 = vpop.f32.mrb[1].mxu1 }
 0x31d   : > { %v1821_v22 = vadd.f32 %v1820_v12, %v1819_v4  ;;  %v1822_v54 = vpop.f32.mrb[2].mxu1 }
 0x31e   : > { %v1823_v16 = vpop.f32.mrb[3].mxu1 }
 0x31f   : > { %v1552_v26 = vadd.f32 %v1821_v22, %v3476_v21  ;;  %v1824_v5 = vadd.f32 %v1823_v16, %v1822_v54 }
 0x321   : > { %1614 = vst [vmem:[%s3481_s27] sm:$0xff] %v1552_v26  ;;  %v1555_v7 = vadd.f32 %v1824_v5, %v3476_v21 }
 0x323   : > { %1615 = vst [vmem:[%s3481_s27 + $0x8] sm:$0xff] %v1555_v7  ;;  %v1825_v63 = vpop.f32.mrb[4].mxu1 }
 0x324   : > { %v1826_v32 = vpop.f32.mrb[5].mxu1 }
 0x325   : > { %v1827_v8 = vadd.f32 %v1826_v32, %v1825_v63  ;;  %v1828_v59 = vpop.f32.mrb[6].mxu1 }
 0x326   : > { %v1829_v23 = vpop.f32.mrb[7].mxu1 }
 0x327   : > { %v1560_v36 = vadd.f32 %v1827_v8, %v3476_v21  ;;  %v1830_v28 = vadd.f32 %v1829_v23, %v1828_v59 }
 0x329   : > { %1616 = vst [vmem:[%s3481_s27 + $0x10] sm:$0xff] %v1560_v36  ;;  %v1563_v60 = vadd.f32 %v1830_v28, %v3476_v21 }
 0x32b   : > { %1617 = vst [vmem:[%s3481_s27 + $0x18] sm:$0xff] %v1563_v60  ;;  %v1831_v29 = vpop.f32.mrb[8].mxu1 }
 0x32c   : > { %v1832_v55 = vpop.f32.mrb[9].mxu1 }
 0x32d   : > { %v1833_v35 = vadd.f32 %v1832_v55, %v1831_v29  ;;  %v1834_v43 = vpop.f32.mrb[10].mxu1 }
 0x32e   : > { %v1835_v47 = vpop.f32.mrb[11].mxu1 }
 0x32f   : > { %v1568_v30 = vadd.f32 %v1833_v35, %v3476_v21  ;;  %v1836_v62 = vadd.f32 %v1835_v47, %v1834_v43 }
 0x331   : > { %1618 = vst [vmem:[%s3481_s27 + $0x20] sm:$0xff] %v1568_v30  ;;  %v1571_v38 = vadd.f32 %v1836_v62, %v3476_v21 }
 0x333   : > { %1619 = vst [vmem:[%s3481_s27 + $0x28] sm:$0xff] %v1571_v38  ;;  %v1837_v46 = vpop.f32.mrb[12].mxu1 }
 0x334   : > { %v1838_v10 = vpop.f32.mrb[13].mxu1 }
 0x335   : > { %v1839_v1 = vadd.f32 %v1838_v10, %v1837_v46  ;;  %v1840_v58 = vpop.f32.mrb[14].mxu1 }
 0x336   : > { %v1841_v14 = vpop.f32.mrb[15].mxu1 }
 0x337   : > { %v1576_v50 = vadd.f32 %v1839_v1, %v3476_v21  ;;  %v1842_v13 = vadd.f32 %v1841_v14, %v1840_v58 }
 0x339   : > { %1620 = vst [vmem:[%s3481_s27 + $0x30] sm:$0xff] %v1576_v50  ;;  %v1579_v42 = vadd.f32 %v1842_v13, %v3476_v21 }
 0x33b   : > { %1621 = vst [vmem:[%s3481_s27 + $0x38] sm:$0xff] %v1579_v42  ;;  %v1843_v61 = vpop.f32.mrb[16].mxu1 }
 0x33c   : > { %v1844_v45 = vpop.f32.mrb[17].mxu1 }
 0x33d   : > { %v1845_v39 = vadd.f32 %v1844_v45, %v1843_v61  ;;  %v1846_v48 = vpop.f32.mrb[18].mxu1 }
 0x33e   : > { %v1847_v41 = vpop.f32.mrb[19].mxu1 }
 0x33f   : > { %v1584_v40 = vadd.f32 %v1845_v39, %v3476_v21  ;;  %v1848_v15 = vadd.f32 %v1847_v41, %v1846_v48 }
 0x341   : > { %1622 = vst [vmem:[%s3481_s27 + $0x40] sm:$0xff] %v1584_v40  ;;  %v1587_v11 = vadd.f32 %v1848_v15, %v3476_v21 }
 0x343   : > { %1623 = vst [vmem:[%s3481_s27 + $0x48] sm:$0xff] %v1587_v11  ;;  %v1849_v18 = vpop.f32.mrb[20].mxu1 }
 0x344   : > { %v1850_v9 = vpop.f32.mrb[21].mxu1 }
 0x345   : > { %v1851_v20 = vadd.f32 %v1850_v9, %v1849_v18  ;;  %v1852_v56 = vpop.f32.mrb[22].mxu1 }
 0x346   : > { %v1853_v27 = vpop.f32.mrb[23].mxu1 }
 0x347   : > { %v1592_v33 = vadd.f32 %v1851_v20, %v3476_v21  ;;  %v1854_v51 = vadd.f32 %v1853_v27, %v1852_v56 }
 0x349   : > { %1624 = vst [vmem:[%s3481_s27 + $0x50] sm:$0xff] %v1592_v33  ;;  %v1595_v3 = vadd.f32 %v1854_v51, %v3476_v21 }
 0x34b   : > { %1625 = vst [vmem:[%s3481_s27 + $0x58] sm:$0xff] %v1595_v3  ;;  %v1855_v2 = vpop.f32.mrb[24].mxu1 }
 0x34c   : > { %v1856_v24 = vpop.f32.mrb[25].mxu1 }
 0x34d   : > { %v1857_v0 = vadd.f32 %v1856_v24, %v1855_v2  ;;  %v1858_v52 = vpop.f32.mrb[26].mxu1 }
 0x34e   : > { %v1859_v19 = vpop.f32.mrb[27].mxu1 }
 0x34f   : > { %v1600_v17 = vadd.f32 %v1857_v0, %v3476_v21  ;;  %v1860_v49 = vadd.f32 %v1859_v19, %v1858_v52 }
 0x351   : > { %1626 = vst [vmem:[%s3481_s27 + $0x60] sm:$0xff] %v1600_v17  ;;  %v1603_v34 = vadd.f32 %v1860_v49, %v3476_v21 }
 0x353   : > { %1627 = vst [vmem:[%s3481_s27 + $0x68] sm:$0xff] %v1603_v34  ;;  %v1861_v44 = vpop.f32.mrb[28].mxu1 }
 0x354   : > { %v1862_v57 = vpop.f32.mrb[29].mxu1 }
 0x355   : > { %v1863_v25 = vadd.f32 %v1862_v57, %v1861_v44  ;;  %v1864_v6 = vpop.f32.mrb[30].mxu1  ;;  %1637 = sbr.rel (!%p3682_p9) target bundleno = 888 (0x378), region = 56 }
 0x356   : > { %v1865_v31 = vpop.f32.mrb[31].mxu1 }
 0x357   : > { %v1608_v37 = vadd.f32 %v1863_v25, %v3476_v21  ;;  %v1866_v53 = vadd.f32 %v1865_v31, %v1864_v6 }
 0x359   : > { %1628 = vst [vmem:[%s3481_s27 + $0x70] sm:$0xff] %v1608_v37  ;;  %v1611_v4 = vadd.f32 %v1866_v53, %v3476_v21 }
 0x35b   : > { %1629 = vst [vmem:[%s3481_s27 + $0x78] sm:$0xff] %v1611_v4 }
 0x35c   : > { %s3692_s12 = smov (!%p1640_p10, %s1639_s12), 16 }
 0x35d   : > { %s3518_s25 = sshll.u32 %s3692_s12, 7 }
 0x35e   : > { %s1644_s28 = ssub.s32 2048, %s3518_s25 }
 0x35f   : > { %1645 = vsyncadd %s1631_s8, %s1644_s28  ;;  %p1795_p1 = scmp.ne.s32.totalorder %s3518_s25, 0  ;;  %s1802_s30 = sshll.u32 %s2324_s22, 11 }
 0x360   : > { %s3528_s11 = scalar_lea.hbm %s3582_s5, %s1802_s30  ;;  %s1650_s14 = sshll.u32 %s3481_s27, 4  ;;  %s3531_s14 = int_to_ptr.vmem [resolvable:$true] %s1650_s14 }
 0x361   : > { %s2188_s15 = scalar_lea.vmem %s3531_s14, %s3518_s25  ;;  %s2270_s16 = smov [#allocation8]  }
 0x362   : > { %p2189_p3 = scmp.ne.s32.totalorder %s3531_s14, %s2188_s15  ;;  %s2192_s29 = sshll.u32 %s2270_s16, 4  ;;  %s2193_s29 = int_to_ptr.vmem [resolvable:$false] %s2192_s29 }
 0x363   : > { %s2194_s22 = scalar_lea.vmem %s2193_s29, 4096  ;;  %p2195_p11 = scmp.lt.s32.totalorder %s3531_s14, %s2193_s29 }
 0x364   : > { %p2190_p5 = pnand %p2189_p3, %p1795_p1  ;;  %p2196_p13 = scmp.lt.s32.totalorder %s2194_s22, %s2188_s15 }
 0x366   : > { %p2191_p6 = pneg %p2190_p5  ;;  %p2197_p0 = por %p2196_p13, %p2195_p11 }
 0x368   : > { %p2198_p12 = pnand %p2197_p0, %p2191_p6 }
 0x36a   : > { %2201 = shalt.err (!%p2198_p12)
}
 0x36b   : > { %s2202_s7 = scalar_lea.hbm %s3528_s11, %s3518_s25  ;;  %s2206_s27 = scalar_lea.hbm %s3582_s5, 3072 }
 0x36c   : > { %p2203_p7 = scmp.ne.s32.totalorder %s3528_s11, %s2202_s7  ;;  %p2207_p9 = scmp.lt.u32.totalorder %s3528_s11, %s3582_s5 }
 0x36d   : > { %p2208_p10 = scmp.lt.u32.totalorder %s2206_s27, %s2202_s7  ;;  %p2210_p5 = scmp.lt.u32.totalorder %s2202_s7, %s3528_s11 }
 0x36e   : > { %p2204_p2 = pnand %p2203_p7, %p1795_p1 }
 0x36f   : > { %p2209_p3 = por %p2208_p10, %p2207_p9 }
 0x370   : > { %p2205_p8 = pneg %p2204_p2 }
 0x371   : > { %p2211_p6 = por %p2210_p5, %p2209_p3 }
 0x373   : > { %p2212_p11 = pnand %p2211_p6, %p2205_p8 }
 0x375   : > { %2215 = shalt.err (!%p2212_p11)
}
 0x376   : > { %s2271_s28 = smov 128   ;;  %s2272_s30 = smov 8  }
 0x377   : > { %1656 = dma.vmem_to_hbm [thread:$0]  (%p1795_p1), %s3531_s14, %s3518_s25, %s3528_s11, %s1631_s8, %s2271_s28, %s2271_s28, %s2272_s30  }
 0x378 PF: > { %s1665_s26 = sand.u32 1, %s2246_s18   ;;  %p3683_p13 = scmp.ne.s32.totalorder %s3607_s6, 0 }
 0x379   : > { %s1666_s9 = scalar_lea.sflag [#allocation4], %s1665_s26 }
 0x37a   : > { %p1885_p0 = pnand %p1746_p4, %p3683_p13 }
 0x37c   : > { %2241 = dma.done.wait (!%p1885_p0), %s1666_s9, 2048  }
 0x37d   : > { %2243 = vsyncadd (!%p1885_p0), %s1666_s9, 4294965248  ;;  %s3684_s15 = sld [smem:[#allocation12_spill]]  ;;  %p19_p12 = scmp.ge.s32.totalorder %s2328_s24, 4  }
 0x37e   : > { %s3685_s18 = smov %s2250_s19  ;;  %s3686_s19 = smov %s2254_s20 }
 0x37f   : > { %s3688_s21 = smov %s2328_s24  ;;  %21 = sbr.rel (!%p19_p12) target bundleno = 6 (0x6), region = 93 }
 0x383   : > { %s3687_s20 = smov %s3684_s15 }
 0x386   :  { %1671 = vsyncpa [#allocation3], 1 }
 0x387   :  { %1673 = vsyncpa [#allocation3 + $0x1], 1 }
 0x388   :  { %1674 = vsyncpa [#allocation6], 1 }
 0x389   :  { %1675 = vsyncpa [#allocation4], 1 }
 0x38a   :  { %1677 = vsyncpa [#allocation4 + $0x1], 1 }

</bundles_post_ra>
